<compile_context>
chip_gen: v7x
topology: tpu7x:2x2x1
jax: 0.10.0
libtpu: 0.0.40
codegen_flags: <defaults>
</compile_context>

<pallas_src>
import jax
import jax.numpy as jnp
from jax import lax
from jax.experimental import pallas as pl
from jax.experimental.pallas import tpu as pltpu


# ----------------------------------------------------------------------------
# Pallas kernel: fused stack of L x [3x3 same-conv + bias + LeakyReLU(0.1)]
# ----------------------------------------------------------------------------
def _paraphraser_kernel(x_ref, w_ref, b_ref, o_ref, apad_ref):
    # x_ref   : (B, H, W*Cpad)       B images per grid step, lane-dense packing
    # w_ref   : (L*3, WC, WC) bf16   banded weights, index = layer*3 + ky
    # b_ref   : (L, 1, WC)    f32    per-layer bias tiled over x positions
    # o_ref   : (B*H, WC)     f32
    # apad_ref: (B, H+2, WC)  f32    persistent activation with 1-row halo
    nb, h, wc = x_ref.shape
    num_layers = b_ref.shape[0]

    # Zero the halo rows (top/bottom of every image) once per grid step; layer
    # stores never touch them, so vertical zero padding is just a row offset —
    # no per-ky jnp.concatenate copies.
    zero_row = jnp.zeros((nb, 1, wc), jnp.float32)
    apad_ref[:, 0:1, :] = zero_row
    apad_ref[:, h + 1:h + 2, :] = zero_row
    apad_ref[:, 1:h + 1, :] = x_ref[...].astype(jnp.float32)

    for l in range(num_layers):
        # Accumulator starts as the (tiled) bias -> no separate bias pass.
        acc = jnp.broadcast_to(b_ref[l], (nb * h, wc))           # (B*H, WC) f32
        for ky in range(3):
            # Vertical tap ky: output row y reads padded input row y + ky.
            # The banded weight folds the 3 kx taps, the Cin contraction and
            # the horizontal zero padding into a single K = WC contraction.
            s = apad_ref[:, ky:ky + h, :].reshape(nb * h, wc)
            acc = acc + jnp.dot(s.astype(jnp.bfloat16),          # bf16 MXU,
                                w_ref[l * 3 + ky],               # f32 accumulate
                                preferred_element_type=jnp.float32)
        act = jnp.maximum(acc, 0.1 * acc)                        # LeakyReLU(0.1)
        if l + 1 < num_layers:
            apad_ref[:, 1:h + 1, :] = act.reshape(nb, h, wc)
        else:
            o_ref[...] = act.astype(o_ref.dtype)


# ----------------------------------------------------------------------------
# Weight-layout helpers (run ONCE per parameter set, not per forward call)
# ----------------------------------------------------------------------------
def _conv_w_to_hwio(w_oihw):
    # PyTorch Conv2d weight (Cout, Cin, kH, kW) -> HWIO (kH, kW, Cin, Cout)
    return jnp.transpose(w_oihw, (2, 3, 1, 0))


def _deconv_w_to_hwio(w_iohw):
    # ConvTranspose2d weight (Cin, Cout, kH, kW) with stride=1/pad=1/k=3
    # == Conv2d(pad=1) with the kernel spatially flipped:
    #   hwio[kh, kw, ci, co] = w[ci, co, 2-kh, 2-kw]
    return jnp.transpose(jnp.flip(w_iohw, axis=(2, 3)), (2, 3, 0, 1))


def _pad_hwio(w_hwio, cpad):
    ci, co = w_hwio.shape[2], w_hwio.shape[3]
    return jnp.pad(w_hwio, ((0, 0), (0, 0), (0, cpad - ci), (0, cpad - co)))


def _banded_weights(w_hwio_pad, width):
    """(3, 3, Cpad, Cpad) HWIO kernel -> (3, width*Cpad, width*Cpad).

    band[ky][xin*Cpad + ci, xout*Cpad + co] = w[ky, kx, ci, co] with
    kx = xin - xout + 1 when 0 <= kx < 3, else 0.  Rows for out-of-image xin
    are absent, so the horizontal zero-padding of a pad=1 conv is built in.
    """
    cpad = w_hwio_pad.shape[-1]
    wc = width * cpad
    xout = jnp.arange(width)
    bands = []
    for ky in range(3):
        m = jnp.zeros((width, cpad, width, cpad), jnp.float32)
        for kx in range(3):
            xin = xout + (kx - 1)
            valid = (xin >= 0) & (xin < width)
            xin_c = jnp.clip(xin, 0, width - 1)
            tap = jnp.where(valid[:, None, None],
                            w_hwio_pad[ky, kx][None, :, :], 0.0)
            m = m.at[xin_c, :, xout, :].add(tap)
        bands.append(m.reshape(wc, wc))
    return jnp.stack(bands)   # (3, WC, WC)


def _layer_list(params, mode):
    enc = [
        (_conv_w_to_hwio(params["conv0_w"]), params["conv0_b"]),
        (_conv_w_to_hwio(params["conv1_w"]), params["conv1_b"]),
        (_conv_w_to_hwio(params["conv2_w"]), params["conv2_b"]),
    ]
    dec = [
        (_deconv_w_to_hwio(params["deconv0_w"]), params["deconv0_b"]),
        (_deconv_w_to_hwio(params["deconv1_w"]), params["deconv1_b"]),
        (_deconv_w_to_hwio(params["deconv2_w"]), params["deconv2_b"]),
    ]
    if mode == 0:
        return enc + dec
    if mode == 1:
        return enc
    if mode == 2:
        return dec
    raise ValueError("mode must be 0, 1 or 2")


def prepare_paraphraser_weights(params, mode, width):
    """One-time re-layout of the module parameters for the fused kernel.

    Returns (w_banded_bf16, b_tiled_f32, c_in, c_out).  Call once per
    parameter set / mode / image width and pass the results into
    paraphraser_forward — the scatter/pad/tile ops here must NOT re-run on
    every forward call.
    """
    layers = _layer_list(params, mode)
    cpad = max(max(wt.shape[2], wt.shape[3]) for wt, _ in layers)
    wc = width * cpad
    # Packed banded weights (bf16 for the MXU): (L*3, WC, WC), index = l*3+ky.
    w_banded = jnp.concatenate(
        [_banded_weights(_pad_hwio(wt, cpad), width) for wt, _ in layers],
        axis=0).astype(jnp.bfloat16)
    # Bias tiled over x positions (kept f32): (L, 1, WC).
    b_tiled = jnp.stack(
        [jnp.tile(jnp.pad(bs.astype(jnp.float32), (0, cpad - bs.shape[0])),
                  width).reshape(1, wc) for _, bs in layers])
    c_in = layers[0][0].shape[2]
    c_out = layers[-1][1].shape[0]
    return w_banded, b_tiled, c_in, c_out


# ----------------------------------------------------------------------------
# Forward wrapper (NCHW in / NCHW out, like the PyTorch module)
# ----------------------------------------------------------------------------
def _pick_images_per_step(n, h):
    """Images per grid step: target M ~ 256 rows per matmul, but keep >= 2
    grid steps (for the 2 TensorCores on v7x) when that still gives M >= 128."""
    target = max(1, 256 // h)
    divisors = [d for d in range(1, n + 1) if n % d == 0]
    cands = [d for d in divisors if d <= target]
    b = max(cands) if cands else 1
    if n // b < 2:
        two_step = [d for d in divisors if n // d >= 2 and d * h >= 128]
        if two_step:
            b = max(two_step)
    return b


def paraphraser_forward(x_nchw, w_banded, b_tiled, c_out):
    n, c_in, h, w = x_nchw.shape
    wc = w_banded.shape[-1]
    cpad = wc // w
    num_layers = b_tiled.shape[0]
    bsz = _pick_images_per_step(n, h)

    # NCHW -> NHWC -> zero-pad channels to Cpad -> lane-dense (N, H, W*Cpad).
    x = jnp.transpose(x_nchw, (0, 2, 3, 1)).astype(jnp.float32)
    x = jnp.pad(x, ((0, 0), (0, 0), (0, 0), (0, cpad - c_in)))
    x2d = x.reshape(n, h, wc)

    out2d = pl.pallas_call(
        _paraphraser_kernel,
        out_shape=jax.ShapeDtypeStruct((n * h, wc), jnp.float32),
        grid=(n // bsz,),
        in_specs=[
            pl.BlockSpec((bsz, h, wc), lambda i: (i, 0, 0)),
            # Constant blocks (same index every step). Small here (<1.3 MiB);
            # at production sizes single-buffer them and raise vmem_limit.
            pl.BlockSpec((3 * num_layers, wc, wc), lambda i: (0, 0, 0)),
            pl.BlockSpec((num_layers, 1, wc), lambda i: (0, 0, 0)),
        ],
        out_specs=pl.BlockSpec((bsz * h, wc), lambda i: (i, 0)),
        scratch_shapes=[pltpu.VMEM((bsz, h + 2, wc), jnp.float32)],
        compiler_params=pltpu.CompilerParams(
            dimension_semantics=("parallel",)),
    )(x2d, w_banded, b_tiled)

    y = out2d.reshape(n, h, w, cpad)[:, :, :, :c_out]
    return jnp.transpose(y, (0, 3, 1, 2))   # -> NCHW


# ----------------------------------------------------------------------------
# Parameter setup (deterministic, synthetic) and pure-JAX reference
# ----------------------------------------------------------------------------
def init_paraphraser_params(key, in_planes, planes):
    ks = jax.random.split(key, 12)
    s = 0.1

    def w(k, shape):
        return (s * jax.random.normal(k, shape)).astype(jnp.float32)

    return {
        # Conv2d weights: (Cout, Cin, 3, 3)
        "conv0_w": w(ks[0], (in_planes, in_planes, 3, 3)),
        "conv0_b": w(ks[1], (in_planes,)),
        "conv1_w": w(ks[2], (planes, in_planes, 3, 3)),
        "conv1_b": w(ks[3], (planes,)),
        "conv2_w": w(ks[4], (planes, planes, 3, 3)),
        "conv2_b": w(ks[5], (planes,)),
        # ConvTranspose2d weights: (Cin, Cout, 3, 3)
        "deconv0_w": w(ks[6], (planes, planes, 3, 3)),
        "deconv0_b": w(ks[7], (planes,)),
        "deconv1_w": w(ks[8], (planes, in_planes, 3, 3)),
        "deconv1_b": w(ks[9], (in_planes,)),
        "deconv2_w": w(ks[10], (in_planes, in_planes, 3, 3)),
        "deconv2_b": w(ks[11], (in_planes,)),
    }


def _ref_layer(x_nhwc, w_hwio, b):
    y = lax.conv_general_dilated(
        x_nhwc, w_hwio, window_strides=(1, 1), padding=((1, 1), (1, 1)),
        dimension_numbers=("NHWC", "HWIO", "NHWC"),
        precision=lax.Precision.HIGHEST)
    y = y + b.reshape(1, 1, 1, -1)
    return jnp.where(y >= 0, y, 0.1 * y)


def paraphraser_reference(params, x_nchw, mode):
    layers = _layer_list(params, mode)
    out = jnp.transpose(x_nchw, (0, 2, 3, 1)).astype(jnp.float32)
    for w_hwio, b in layers:
        out = _ref_layer(out, w_hwio, b)
    return jnp.transpose(out, (0, 3, 1, 2))


# ----------------------------------------------------------------------------
if __name__ == "__main__":
    key = jax.random.PRNGKey(0)
    k_param, k_x4, k_x8 = jax.random.split(key, 3)

    in_planes, planes = 4, 8
    N, H, W = 2, 16, 16

    params = init_paraphraser_params(k_param, in_planes, planes)
    x_enc = jax.random.normal(k_x4, (N, in_planes, H, W), dtype=jnp.float32)
    x_dec = jax.random.normal(k_x8, (N, planes, H, W), dtype=jnp.float32)

    fwd = jax.jit(paraphraser_forward, static_argnames=("c_out",))
    ref = jax.jit(paraphraser_reference, static_argnames=("mode",))

    cases = [
        (0, x_enc),   # encoder + decoder
        (1, x_enc),   # encoder only (factor)
        (2, x_dec),   # decoder only (consumes a `planes`-channel factor)
    ]
    ok = True
    for mode, xin in cases:
        # One-time parameter re-layout (hoisted out of the per-call forward).
        w_banded, b_tiled, c_in, c_out = prepare_paraphraser_weights(
            params, mode, W)
        if c_in != xin.shape[1]:
            ok = False
            continue
        y = jax.block_until_ready(fwd(xin, w_banded, b_tiled, c_out=c_out))
        y_ref = jax.block_until_ready(ref(params, xin, mode=mode))
        if y.shape != (N, c_out, H, W):
            ok = False
        # bf16 MXU operands with f32 accumulation vs. f32 HIGHEST reference.
        elif not bool(jnp.allclose(y, y_ref, atol=5e-3, rtol=5e-3)):
            ok = False

    if ok:
        print("KERNEL_OK")
</pallas_src>

<mosaic_0001>
module attributes {stable_mosaic.version = 11 : i64} {
  func.func @_paraphraser_kernel(%arg0: i32, %arg1: memref<2x16x128xf32, #tpu.memory_space<vmem>>, %arg2: memref<18x128x128xbf16, #tpu.memory_space<vmem>>, %arg3: memref<6x1x128xf32, #tpu.memory_space<vmem>>, %arg4: memref<32x128xf32, #tpu.memory_space<vmem>>, %arg5: memref<2x18x128xf32, #tpu.memory_space<vmem>>) attributes {dimension_semantics = [#tpu.dimension_semantics<parallel>], iteration_bounds = array<i64: 1>, scalar_prefetch = 0 : i64, scratch_operands = 1 : i64, tpu.core_type = #tpu.core_type<tc>, window_params = [{transform_indices = @transform_0, window_bounds = array<i64: 2, 16, 128>}, {pipeline_mode = #tpu.pipeline_mode<synchronous>, transform_indices = @transform_1, window_bounds = array<i64: 18, 128, 128>}, {pipeline_mode = #tpu.pipeline_mode<synchronous>, transform_indices = @transform_2, window_bounds = array<i64: 6, 1, 128>}, {transform_indices = @transform_3, window_bounds = array<i64: 32, 128>}]} {
    %cst = arith.constant 0.000000e+00 : f32
    %0 = vector.broadcast %cst : f32 to vector<2x1x128xf32>
    %c0 = arith.constant 0 : index
    %c0_0 = arith.constant 0 : index
    %c0_1 = arith.constant 0 : index
    %1 = vector.load %arg5[%c0, %c0_0, %c0_1] : memref<2x18x128xf32, #tpu.memory_space<vmem>>, vector<2x1x128xf32>
    tpu.vector_store %arg5[%c0, %c0_0, %c0_1], %0 {strides = array<i32>} : memref<2x18x128xf32, #tpu.memory_space<vmem>>, vector<2x1x128xf32>,
    %c0_2 = arith.constant 0 : index
    %c17 = arith.constant 17 : index
    %c0_3 = arith.constant 0 : index
    %2 = vector.load %arg5[%c0_2, %c17, %c0_3] : memref<2x18x128xf32, #tpu.memory_space<vmem>>, vector<2x1x128xf32>
    tpu.vector_store %arg5[%c0_2, %c17, %c0_3], %0 {strides = array<i32>} : memref<2x18x128xf32, #tpu.memory_space<vmem>>, vector<2x1x128xf32>,
    %c0_4 = arith.constant 0 : index
    %c0_5 = arith.constant 0 : index
    %c0_6 = arith.constant 0 : index
    %3 = vector.load %arg1[%c0_4, %c0_5, %c0_6] : memref<2x16x128xf32, #tpu.memory_space<vmem>>, vector<2x16x128xf32>
    %c0_7 = arith.constant 0 : index
    %c1 = arith.constant 1 : index
    %c0_8 = arith.constant 0 : index
    %4 = vector.load %arg5[%c0_7, %c1, %c0_8] : memref<2x18x128xf32, #tpu.memory_space<vmem>>, vector<2x16x128xf32>
    tpu.vector_store %arg5[%c0_7, %c1, %c0_8], %3 {strides = array<i32>} : memref<2x18x128xf32, #tpu.memory_space<vmem>>, vector<2x16x128xf32>,
    %c0_9 = arith.constant 0 : index
    %c0_10 = arith.constant 0 : index
    %c0_11 = arith.constant 0 : index
    %5 = vector.load %arg3[%c0_9, %c0_10, %c0_11] : memref<6x1x128xf32, #tpu.memory_space<vmem>>, vector<1x1x128xf32>
    %6 = vector.shape_cast %5 : vector<1x1x128xf32> to vector<1x128xf32>
    %7 = vector.shape_cast %6 : vector<1x128xf32> to vector<1x128xf32>
    %8 = vector.broadcast %7 : vector<1x128xf32> to vector<32x128xf32>
    %c0_12 = arith.constant 0 : index
    %c0_13 = arith.constant 0 : index
    %c0_14 = arith.constant 0 : index
    %9 = vector.load %arg5[%c0_12, %c0_13, %c0_14] : memref<2x18x128xf32, #tpu.memory_space<vmem>>, vector<2x16x128xf32>
    %10 = vector.shape_cast %9 : vector<2x16x128xf32> to vector<32x128xf32>
    %11 = arith.truncf %10 : vector<32x128xf32> to vector<32x128xbf16>
    %c0_15 = arith.constant 0 : index
    %c0_16 = arith.constant 0 : index
    %c0_17 = arith.constant 0 : index
    %12 = vector.load %arg2[%c0_15, %c0_16, %c0_17] : memref<18x128x128xbf16, #tpu.memory_space<vmem>>, vector<1x128x128xbf16>
    %13 = vector.shape_cast %12 : vector<1x128x128xbf16> to vector<128x128xbf16>
    %cst_18 = arith.constant dense<0.000000e+00> : vector<32x128xf32>
    %14 = tpu.matmul %11, %13, %cst_18 {dimension_numbers = #tpu.dot_dimension_numbers<[1], [0], [0], [1], [0, 0, 1, 1], [], []>} : vector<32x128xbf16>, vector<128x128xbf16>, vector<32x128xf32> -> vector<32x128xf32>
    %15 = arith.addf %8, %14 : vector<32x128xf32>
    %c0_19 = arith.constant 0 : index
    %c1_20 = arith.constant 1 : index
    %c0_21 = arith.constant 0 : index
    %16 = vector.load %arg5[%c0_19, %c1_20, %c0_21] : memref<2x18x128xf32, #tpu.memory_space<vmem>>, vector<2x16x128xf32>
    %17 = vector.shape_cast %16 : vector<2x16x128xf32> to vector<32x128xf32>
    %18 = arith.truncf %17 : vector<32x128xf32> to vector<32x128xbf16>
    %c1_22 = arith.constant 1 : index
    %c0_23 = arith.constant 0 : index
    %c0_24 = arith.constant 0 : index
    %19 = vector.load %arg2[%c1_22, %c0_23, %c0_24] : memref<18x128x128xbf16, #tpu.memory_space<vmem>>, vector<1x128x128xbf16>
    %20 = vector.shape_cast %19 : vector<1x128x128xbf16> to vector<128x128xbf16>
    %cst_25 = arith.constant dense<0.000000e+00> : vector<32x128xf32>
    %21 = tpu.matmul %18, %20, %cst_25 {dimension_numbers = #tpu.dot_dimension_numbers<[1], [0], [0], [1], [0, 0, 1, 1], [], []>} : vector<32x128xbf16>, vector<128x128xbf16>, vector<32x128xf32> -> vector<32x128xf32>
    %22 = arith.addf %15, %21 : vector<32x128xf32>
    %c0_26 = arith.constant 0 : index
    %c2 = arith.constant 2 : index
    %c0_27 = arith.constant 0 : index
    %23 = vector.load %arg5[%c0_26, %c2, %c0_27] : memref<2x18x128xf32, #tpu.memory_space<vmem>>, vector<2x16x128xf32>
    %24 = vector.shape_cast %23 : vector<2x16x128xf32> to vector<32x128xf32>
    %25 = arith.truncf %24 : vector<32x128xf32> to vector<32x128xbf16>
    %c2_28 = arith.constant 2 : index
    %c0_29 = arith.constant 0 : index
    %c0_30 = arith.constant 0 : index
    %26 = vector.load %arg2[%c2_28, %c0_29, %c0_30] : memref<18x128x128xbf16, #tpu.memory_space<vmem>>, vector<1x128x128xbf16>
    %27 = vector.shape_cast %26 : vector<1x128x128xbf16> to vector<128x128xbf16>
    %cst_31 = arith.constant dense<0.000000e+00> : vector<32x128xf32>
    %28 = tpu.matmul %25, %27, %cst_31 {dimension_numbers = #tpu.dot_dimension_numbers<[1], [0], [0], [1], [0, 0, 1, 1], [], []>} : vector<32x128xbf16>, vector<128x128xbf16>, vector<32x128xf32> -> vector<32x128xf32>
    %29 = arith.addf %22, %28 : vector<32x128xf32>
    %cst_32 = arith.constant 1.000000e-01 : f32
    %30 = vector.broadcast %cst_32 : f32 to vector<32x128xf32>
    %31 = arith.mulf %30, %29 : vector<32x128xf32>
    %32 = arith.maximumf %29, %31 : vector<32x128xf32>
    %33 = vector.shape_cast %32 : vector<32x128xf32> to vector<2x16x128xf32>
    %c0_33 = arith.constant 0 : index
    %c1_34 = arith.constant 1 : index
    %c0_35 = arith.constant 0 : index
    %34 = vector.load %arg5[%c0_33, %c1_34, %c0_35] : memref<2x18x128xf32, #tpu.memory_space<vmem>>, vector<2x16x128xf32>
    tpu.vector_store %arg5[%c0_33, %c1_34, %c0_35], %33 {strides = array<i32>} : memref<2x18x128xf32, #tpu.memory_space<vmem>>, vector<2x16x128xf32>,
    %c1_36 = arith.constant 1 : index
    %c0_37 = arith.constant 0 : index
    %c0_38 = arith.constant 0 : index
    %35 = vector.load %arg3[%c1_36, %c0_37, %c0_38] : memref<6x1x128xf32, #tpu.memory_space<vmem>>, vector<1x1x128xf32>
    %36 = vector.shape_cast %35 : vector<1x1x128xf32> to vector<1x128xf32>
    %37 = vector.shape_cast %36 : vector<1x128xf32> to vector<1x128xf32>
    %38 = vector.broadcast %37 : vector<1x128xf32> to vector<32x128xf32>
    %c0_39 = arith.constant 0 : index
    %c0_40 = arith.constant 0 : index
    %c0_41 = arith.constant 0 : index
    %39 = vector.load %arg5[%c0_39, %c0_40, %c0_41] : memref<2x18x128xf32, #tpu.memory_space<vmem>>, vector<2x16x128xf32>
    %40 = vector.shape_cast %39 : vector<2x16x128xf32> to vector<32x128xf32>
    %41 = arith.truncf %40 : vector<32x128xf32> to vector<32x128xbf16>
    %c3 = arith.constant 3 : index
    %c0_42 = arith.constant 0 : index
    %c0_43 = arith.constant 0 : index
    %42 = vector.load %arg2[%c3, %c0_42, %c0_43] : memref<18x128x128xbf16, #tpu.memory_space<vmem>>, vector<1x128x128xbf16>
    %43 = vector.shape_cast %42 : vector<1x128x128xbf16> to vector<128x128xbf16>
    %cst_44 = arith.constant dense<0.000000e+00> : vector<32x128xf32>
    %44 = tpu.matmul %41, %43, %cst_44 {dimension_numbers = #tpu.dot_dimension_numbers<[1], [0], [0], [1], [0, 0, 1, 1], [], []>} : vector<32x128xbf16>, vector<128x128xbf16>, vector<32x128xf32> -> vector<32x128xf32>
    %45 = arith.addf %38, %44 : vector<32x128xf32>
    %c0_45 = arith.constant 0 : index
    %c1_46 = arith.constant 1 : index
    %c0_47 = arith.constant 0 : index
    %46 = vector.load %arg5[%c0_45, %c1_46, %c0_47] : memref<2x18x128xf32, #tpu.memory_space<vmem>>, vector<2x16x128xf32>
    %47 = vector.shape_cast %46 : vector<2x16x128xf32> to vector<32x128xf32>
    %48 = arith.truncf %47 : vector<32x128xf32> to vector<32x128xbf16>
    %c4 = arith.constant 4 : index
    %c0_48 = arith.constant 0 : index
    %c0_49 = arith.constant 0 : index
    %49 = vector.load %arg2[%c4, %c0_48, %c0_49] : memref<18x128x128xbf16, #tpu.memory_space<vmem>>, vector<1x128x128xbf16>
    %50 = vector.shape_cast %49 : vector<1x128x128xbf16> to vector<128x128xbf16>
    %cst_50 = arith.constant dense<0.000000e+00> : vector<32x128xf32>
    %51 = tpu.matmul %48, %50, %cst_50 {dimension_numbers = #tpu.dot_dimension_numbers<[1], [0], [0], [1], [0, 0, 1, 1], [], []>} : vector<32x128xbf16>, vector<128x128xbf16>, vector<32x128xf32> -> vector<32x128xf32>
    %52 = arith.addf %45, %51 : vector<32x128xf32>
    %c0_51 = arith.constant 0 : index
    %c2_52 = arith.constant 2 : index
    %c0_53 = arith.constant 0 : index
    %53 = vector.load %arg5[%c0_51, %c2_52, %c0_53] : memref<2x18x128xf32, #tpu.memory_space<vmem>>, vector<2x16x128xf32>
    %54 = vector.shape_cast %53 : vector<2x16x128xf32> to vector<32x128xf32>
    %55 = arith.truncf %54 : vector<32x128xf32> to vector<32x128xbf16>
    %c5 = arith.constant 5 : index
    %c0_54 = arith.constant 0 : index
    %c0_55 = arith.constant 0 : index
    %56 = vector.load %arg2[%c5, %c0_54, %c0_55] : memref<18x128x128xbf16, #tpu.memory_space<vmem>>, vector<1x128x128xbf16>
    %57 = vector.shape_cast %56 : vector<1x128x128xbf16> to vector<128x128xbf16>
    %cst_56 = arith.constant dense<0.000000e+00> : vector<32x128xf32>
    %58 = tpu.matmul %55, %57, %cst_56 {dimension_numbers = #tpu.dot_dimension_numbers<[1], [0], [0], [1], [0, 0, 1, 1], [], []>} : vector<32x128xbf16>, vector<128x128xbf16>, vector<32x128xf32> -> vector<32x128xf32>
    %59 = arith.addf %52, %58 : vector<32x128xf32>
    %cst_57 = arith.constant 1.000000e-01 : f32
    %60 = vector.broadcast %cst_57 : f32 to vector<32x128xf32>
    %61 = arith.mulf %60, %59 : vector<32x128xf32>
    %62 = arith.maximumf %59, %61 : vector<32x128xf32>
    %63 = vector.shape_cast %62 : vector<32x128xf32> to vector<2x16x128xf32>
    %c0_58 = arith.constant 0 : index
    %c1_59 = arith.constant 1 : index
    %c0_60 = arith.constant 0 : index
    %64 = vector.load %arg5[%c0_58, %c1_59, %c0_60] : memref<2x18x128xf32, #tpu.memory_space<vmem>>, vector<2x16x128xf32>
    tpu.vector_store %arg5[%c0_58, %c1_59, %c0_60], %63 {strides = array<i32>} : memref<2x18x128xf32, #tpu.memory_space<vmem>>, vector<2x16x128xf32>,
    %c2_61 = arith.constant 2 : index
    %c0_62 = arith.constant 0 : index
    %c0_63 = arith.constant 0 : index
    %65 = vector.load %arg3[%c2_61, %c0_62, %c0_63] : memref<6x1x128xf32, #tpu.memory_space<vmem>>, vector<1x1x128xf32>
    %66 = vector.shape_cast %65 : vector<1x1x128xf32> to vector<1x128xf32>
    %67 = vector.shape_cast %66 : vector<1x128xf32> to vector<1x128xf32>
    %68 = vector.broadcast %67 : vector<1x128xf32> to vector<32x128xf32>
    %c0_64 = arith.constant 0 : index
    %c0_65 = arith.constant 0 : index
    %c0_66 = arith.constant 0 : index
    %69 = vector.load %arg5[%c0_64, %c0_65, %c0_66] : memref<2x18x128xf32, #tpu.memory_space<vmem>>, vector<2x16x128xf32>
    %70 = vector.shape_cast %69 : vector<2x16x128xf32> to vector<32x128xf32>
    %71 = arith.truncf %70 : vector<32x128xf32> to vector<32x128xbf16>
    %c6 = arith.constant 6 : index
    %c0_67 = arith.constant 0 : index
    %c0_68 = arith.constant 0 : index
    %72 = vector.load %arg2[%c6, %c0_67, %c0_68] : memref<18x128x128xbf16, #tpu.memory_space<vmem>>, vector<1x128x128xbf16>
    %73 = vector.shape_cast %72 : vector<1x128x128xbf16> to vector<128x128xbf16>
    %cst_69 = arith.constant dense<0.000000e+00> : vector<32x128xf32>
    %74 = tpu.matmul %71, %73, %cst_69 {dimension_numbers = #tpu.dot_dimension_numbers<[1], [0], [0], [1], [0, 0, 1, 1], [], []>} : vector<32x128xbf16>, vector<128x128xbf16>, vector<32x128xf32> -> vector<32x128xf32>
    %75 = arith.addf %68, %74 : vector<32x128xf32>
    %c0_70 = arith.constant 0 : index
    %c1_71 = arith.constant 1 : index
    %c0_72 = arith.constant 0 : index
    %76 = vector.load %arg5[%c0_70, %c1_71, %c0_72] : memref<2x18x128xf32, #tpu.memory_space<vmem>>, vector<2x16x128xf32>
    %77 = vector.shape_cast %76 : vector<2x16x128xf32> to vector<32x128xf32>
    %78 = arith.truncf %77 : vector<32x128xf32> to vector<32x128xbf16>
    %c7 = arith.constant 7 : index
    %c0_73 = arith.constant 0 : index
    %c0_74 = arith.constant 0 : index
    %79 = vector.load %arg2[%c7, %c0_73, %c0_74] : memref<18x128x128xbf16, #tpu.memory_space<vmem>>, vector<1x128x128xbf16>
    %80 = vector.shape_cast %79 : vector<1x128x128xbf16> to vector<128x128xbf16>
    %cst_75 = arith.constant dense<0.000000e+00> : vector<32x128xf32>
    %81 = tpu.matmul %78, %80, %cst_75 {dimension_numbers = #tpu.dot_dimension_numbers<[1], [0], [0], [1], [0, 0, 1, 1], [], []>} : vector<32x128xbf16>, vector<128x128xbf16>, vector<32x128xf32> -> vector<32x128xf32>
    %82 = arith.addf %75, %81 : vector<32x128xf32>
    %c0_76 = arith.constant 0 : index
    %c2_77 = arith.constant 2 : index
    %c0_78 = arith.constant 0 : index
    %83 = vector.load %arg5[%c0_76, %c2_77, %c0_78] : memref<2x18x128xf32, #tpu.memory_space<vmem>>, vector<2x16x128xf32>
    %84 = vector.shape_cast %83 : vector<2x16x128xf32> to vector<32x128xf32>
    %85 = arith.truncf %84 : vector<32x128xf32> to vector<32x128xbf16>
    %c8 = arith.constant 8 : index
    %c0_79 = arith.constant 0 : index
    %c0_80 = arith.constant 0 : index
    %86 = vector.load %arg2[%c8, %c0_79, %c0_80] : memref<18x128x128xbf16, #tpu.memory_space<vmem>>, vector<1x128x128xbf16>
    %87 = vector.shape_cast %86 : vector<1x128x128xbf16> to vector<128x128xbf16>
    %cst_81 = arith.constant dense<0.000000e+00> : vector<32x128xf32>
    %88 = tpu.matmul %85, %87, %cst_81 {dimension_numbers = #tpu.dot_dimension_numbers<[1], [0], [0], [1], [0, 0, 1, 1], [], []>} : vector<32x128xbf16>, vector<128x128xbf16>, vector<32x128xf32> -> vector<32x128xf32>
    %89 = arith.addf %82, %88 : vector<32x128xf32>
    %cst_82 = arith.constant 1.000000e-01 : f32
    %90 = vector.broadcast %cst_82 : f32 to vector<32x128xf32>
    %91 = arith.mulf %90, %89 : vector<32x128xf32>
    %92 = arith.maximumf %89, %91 : vector<32x128xf32>
    %93 = vector.shape_cast %92 : vector<32x128xf32> to vector<2x16x128xf32>
    %c0_83 = arith.constant 0 : index
    %c1_84 = arith.constant 1 : index
    %c0_85 = arith.constant 0 : index
    %94 = vector.load %arg5[%c0_83, %c1_84, %c0_85] : memref<2x18x128xf32, #tpu.memory_space<vmem>>, vector<2x16x128xf32>
    tpu.vector_store %arg5[%c0_83, %c1_84, %c0_85], %93 {strides = array<i32>} : memref<2x18x128xf32, #tpu.memory_space<vmem>>, vector<2x16x128xf32>,
    %c3_86 = arith.constant 3 : index
    %c0_87 = arith.constant 0 : index
    %c0_88 = arith.constant 0 : index
    %95 = vector.load %arg3[%c3_86, %c0_87, %c0_88] : memref<6x1x128xf32, #tpu.memory_space<vmem>>, vector<1x1x128xf32>
    %96 = vector.shape_cast %95 : vector<1x1x128xf32> to vector<1x128xf32>
    %97 = vector.shape_cast %96 : vector<1x128xf32> to vector<1x128xf32>
    %98 = vector.broadcast %97 : vector<1x128xf32> to vector<32x128xf32>
    %c0_89 = arith.constant 0 : index
    %c0_90 = arith.constant 0 : index
    %c0_91 = arith.constant 0 : index
    %99 = vector.load %arg5[%c0_89, %c0_90, %c0_91] : memref<2x18x128xf32, #tpu.memory_space<vmem>>, vector<2x16x128xf32>
    %100 = vector.shape_cast %99 : vector<2x16x128xf32> to vector<32x128xf32>
    %101 = arith.truncf %100 : vector<32x128xf32> to vector<32x128xbf16>
    %c9 = arith.constant 9 : index
    %c0_92 = arith.constant 0 : index
    %c0_93 = arith.constant 0 : index
    %102 = vector.load %arg2[%c9, %c0_92, %c0_93] : memref<18x128x128xbf16, #tpu.memory_space<vmem>>, vector<1x128x128xbf16>
    %103 = vector.shape_cast %102 : vector<1x128x128xbf16> to vector<128x128xbf16>
    %cst_94 = arith.constant dense<0.000000e+00> : vector<32x128xf32>
    %104 = tpu.matmul %101, %103, %cst_94 {dimension_numbers = #tpu.dot_dimension_numbers<[1], [0], [0], [1], [0, 0, 1, 1], [], []>} : vector<32x128xbf16>, vector<128x128xbf16>, vector<32x128xf32> -> vector<32x128xf32>
    %105 = arith.addf %98, %104 : vector<32x128xf32>
    %c0_95 = arith.constant 0 : index
    %c1_96 = arith.constant 1 : index
    %c0_97 = arith.constant 0 : index
    %106 = vector.load %arg5[%c0_95, %c1_96, %c0_97] : memref<2x18x128xf32, #tpu.memory_space<vmem>>, vector<2x16x128xf32>
    %107 = vector.shape_cast %106 : vector<2x16x128xf32> to vector<32x128xf32>
    %108 = arith.truncf %107 : vector<32x128xf32> to vector<32x128xbf16>
    %c10 = arith.constant 10 : index
    %c0_98 = arith.constant 0 : index
    %c0_99 = arith.constant 0 : index
    %109 = vector.load %arg2[%c10, %c0_98, %c0_99] : memref<18x128x128xbf16, #tpu.memory_space<vmem>>, vector<1x128x128xbf16>
    %110 = vector.shape_cast %109 : vector<1x128x128xbf16> to vector<128x128xbf16>
    %cst_100 = arith.constant dense<0.000000e+00> : vector<32x128xf32>
    %111 = tpu.matmul %108, %110, %cst_100 {dimension_numbers = #tpu.dot_dimension_numbers<[1], [0], [0], [1], [0, 0, 1, 1], [], []>} : vector<32x128xbf16>, vector<128x128xbf16>, vector<32x128xf32> -> vector<32x128xf32>
    %112 = arith.addf %105, %111 : vector<32x128xf32>
    %c0_101 = arith.constant 0 : index
    %c2_102 = arith.constant 2 : index
    %c0_103 = arith.constant 0 : index
    %113 = vector.load %arg5[%c0_101, %c2_102, %c0_103] : memref<2x18x128xf32, #tpu.memory_space<vmem>>, vector<2x16x128xf32>
    %114 = vector.shape_cast %113 : vector<2x16x128xf32> to vector<32x128xf32>
    %115 = arith.truncf %114 : vector<32x128xf32> to vector<32x128xbf16>
    %c11 = arith.constant 11 : index
    %c0_104 = arith.constant 0 : index
    %c0_105 = arith.constant 0 : index
    %116 = vector.load %arg2[%c11, %c0_104, %c0_105] : memref<18x128x128xbf16, #tpu.memory_space<vmem>>, vector<1x128x128xbf16>
    %117 = vector.shape_cast %116 : vector<1x128x128xbf16> to vector<128x128xbf16>
    %cst_106 = arith.constant dense<0.000000e+00> : vector<32x128xf32>
    %118 = tpu.matmul %115, %117, %cst_106 {dimension_numbers = #tpu.dot_dimension_numbers<[1], [0], [0], [1], [0, 0, 1, 1], [], []>} : vector<32x128xbf16>, vector<128x128xbf16>, vector<32x128xf32> -> vector<32x128xf32>
    %119 = arith.addf %112, %118 : vector<32x128xf32>
    %cst_107 = arith.constant 1.000000e-01 : f32
    %120 = vector.broadcast %cst_107 : f32 to vector<32x128xf32>
    %121 = arith.mulf %120, %119 : vector<32x128xf32>
    %122 = arith.maximumf %119, %121 : vector<32x128xf32>
    %123 = vector.shape_cast %122 : vector<32x128xf32> to vector<2x16x128xf32>
    %c0_108 = arith.constant 0 : index
    %c1_109 = arith.constant 1 : index
    %c0_110 = arith.constant 0 : index
    %124 = vector.load %arg5[%c0_108, %c1_109, %c0_110] : memref<2x18x128xf32, #tpu.memory_space<vmem>>, vector<2x16x128xf32>
    tpu.vector_store %arg5[%c0_108, %c1_109, %c0_110], %123 {strides = array<i32>} : memref<2x18x128xf32, #tpu.memory_space<vmem>>, vector<2x16x128xf32>,
    %c4_111 = arith.constant 4 : index
    %c0_112 = arith.constant 0 : index
    %c0_113 = arith.constant 0 : index
    %125 = vector.load %arg3[%c4_111, %c0_112, %c0_113] : memref<6x1x128xf32, #tpu.memory_space<vmem>>, vector<1x1x128xf32>
    %126 = vector.shape_cast %125 : vector<1x1x128xf32> to vector<1x128xf32>
    %127 = vector.shape_cast %126 : vector<1x128xf32> to vector<1x128xf32>
    %128 = vector.broadcast %127 : vector<1x128xf32> to vector<32x128xf32>
    %c0_114 = arith.constant 0 : index
    %c0_115 = arith.constant 0 : index
    %c0_116 = arith.constant 0 : index
    %129 = vector.load %arg5[%c0_114, %c0_115, %c0_116] : memref<2x18x128xf32, #tpu.memory_space<vmem>>, vector<2x16x128xf32>
    %130 = vector.shape_cast %129 : vector<2x16x128xf32> to vector<32x128xf32>
    %131 = arith.truncf %130 : vector<32x128xf32> to vector<32x128xbf16>
    %c12 = arith.constant 12 : index
    %c0_117 = arith.constant 0 : index
    %c0_118 = arith.constant 0 : index
    %132 = vector.load %arg2[%c12, %c0_117, %c0_118] : memref<18x128x128xbf16, #tpu.memory_space<vmem>>, vector<1x128x128xbf16>
    %133 = vector.shape_cast %132 : vector<1x128x128xbf16> to vector<128x128xbf16>
    %cst_119 = arith.constant dense<0.000000e+00> : vector<32x128xf32>
    %134 = tpu.matmul %131, %133, %cst_119 {dimension_numbers = #tpu.dot_dimension_numbers<[1], [0], [0], [1], [0, 0, 1, 1], [], []>} : vector<32x128xbf16>, vector<128x128xbf16>, vector<32x128xf32> -> vector<32x128xf32>
    %135 = arith.addf %128, %134 : vector<32x128xf32>
    %c0_120 = arith.constant 0 : index
    %c1_121 = arith.constant 1 : index
    %c0_122 = arith.constant 0 : index
    %136 = vector.load %arg5[%c0_120, %c1_121, %c0_122] : memref<2x18x128xf32, #tpu.memory_space<vmem>>, vector<2x16x128xf32>
    %137 = vector.shape_cast %136 : vector<2x16x128xf32> to vector<32x128xf32>
    %138 = arith.truncf %137 : vector<32x128xf32> to vector<32x128xbf16>
    %c13 = arith.constant 13 : index
    %c0_123 = arith.constant 0 : index
    %c0_124 = arith.constant 0 : index
    %139 = vector.load %arg2[%c13, %c0_123, %c0_124] : memref<18x128x128xbf16, #tpu.memory_space<vmem>>, vector<1x128x128xbf16>
    %140 = vector.shape_cast %139 : vector<1x128x128xbf16> to vector<128x128xbf16>
    %cst_125 = arith.constant dense<0.000000e+00> : vector<32x128xf32>
    %141 = tpu.matmul %138, %140, %cst_125 {dimension_numbers = #tpu.dot_dimension_numbers<[1], [0], [0], [1], [0, 0, 1, 1], [], []>} : vector<32x128xbf16>, vector<128x128xbf16>, vector<32x128xf32> -> vector<32x128xf32>
    %142 = arith.addf %135, %141 : vector<32x128xf32>
    %c0_126 = arith.constant 0 : index
    %c2_127 = arith.constant 2 : index
    %c0_128 = arith.constant 0 : index
    %143 = vector.load %arg5[%c0_126, %c2_127, %c0_128] : memref<2x18x128xf32, #tpu.memory_space<vmem>>, vector<2x16x128xf32>
    %144 = vector.shape_cast %143 : vector<2x16x128xf32> to vector<32x128xf32>
    %145 = arith.truncf %144 : vector<32x128xf32> to vector<32x128xbf16>
    %c14 = arith.constant 14 : index
    %c0_129 = arith.constant 0 : index
    %c0_130 = arith.constant 0 : index
    %146 = vector.load %arg2[%c14, %c0_129, %c0_130] : memref<18x128x128xbf16, #tpu.memory_space<vmem>>, vector<1x128x128xbf16>
    %147 = vector.shape_cast %146 : vector<1x128x128xbf16> to vector<128x128xbf16>
    %cst_131 = arith.constant dense<0.000000e+00> : vector<32x128xf32>
    %148 = tpu.matmul %145, %147, %cst_131 {dimension_numbers = #tpu.dot_dimension_numbers<[1], [0], [0], [1], [0, 0, 1, 1], [], []>} : vector<32x128xbf16>, vector<128x128xbf16>, vector<32x128xf32> -> vector<32x128xf32>
    %149 = arith.addf %142, %148 : vector<32x128xf32>
    %cst_132 = arith.constant 1.000000e-01 : f32
    %150 = vector.broadcast %cst_132 : f32 to vector<32x128xf32>
    %151 = arith.mulf %150, %149 : vector<32x128xf32>
    %152 = arith.maximumf %149, %151 : vector<32x128xf32>
    %153 = vector.shape_cast %152 : vector<32x128xf32> to vector<2x16x128xf32>
    %c0_133 = arith.constant 0 : index
    %c1_134 = arith.constant 1 : index
    %c0_135 = arith.constant 0 : index
    %154 = vector.load %arg5[%c0_133, %c1_134, %c0_135] : memref<2x18x128xf32, #tpu.memory_space<vmem>>, vector<2x16x128xf32>
    tpu.vector_store %arg5[%c0_133, %c1_134, %c0_135], %153 {strides = array<i32>} : memref<2x18x128xf32, #tpu.memory_space<vmem>>, vector<2x16x128xf32>,
    %c5_136 = arith.constant 5 : index
    %c0_137 = arith.constant 0 : index
    %c0_138 = arith.constant 0 : index
    %155 = vector.load %arg3[%c5_136, %c0_137, %c0_138] : memref<6x1x128xf32, #tpu.memory_space<vmem>>, vector<1x1x128xf32>
    %156 = vector.shape_cast %155 : vector<1x1x128xf32> to vector<1x128xf32>
    %157 = vector.shape_cast %156 : vector<1x128xf32> to vector<1x128xf32>
    %158 = vector.broadcast %157 : vector<1x128xf32> to vector<32x128xf32>
    %c0_139 = arith.constant 0 : index
    %c0_140 = arith.constant 0 : index
    %c0_141 = arith.constant 0 : index
    %159 = vector.load %arg5[%c0_139, %c0_140, %c0_141] : memref<2x18x128xf32, #tpu.memory_space<vmem>>, vector<2x16x128xf32>
    %160 = vector.shape_cast %159 : vector<2x16x128xf32> to vector<32x128xf32>
    %161 = arith.truncf %160 : vector<32x128xf32> to vector<32x128xbf16>
    %c15 = arith.constant 15 : index
    %c0_142 = arith.constant 0 : index
    %c0_143 = arith.constant 0 : index
    %162 = vector.load %arg2[%c15, %c0_142, %c0_143] : memref<18x128x128xbf16, #tpu.memory_space<vmem>>, vector<1x128x128xbf16>
    %163 = vector.shape_cast %162 : vector<1x128x128xbf16> to vector<128x128xbf16>
    %cst_144 = arith.constant dense<0.000000e+00> : vector<32x128xf32>
    %164 = tpu.matmul %161, %163, %cst_144 {dimension_numbers = #tpu.dot_dimension_numbers<[1], [0], [0], [1], [0, 0, 1, 1], [], []>} : vector<32x128xbf16>, vector<128x128xbf16>, vector<32x128xf32> -> vector<32x128xf32>
    %165 = arith.addf %158, %164 : vector<32x128xf32>
    %c0_145 = arith.constant 0 : index
    %c1_146 = arith.constant 1 : index
    %c0_147 = arith.constant 0 : index
    %166 = vector.load %arg5[%c0_145, %c1_146, %c0_147] : memref<2x18x128xf32, #tpu.memory_space<vmem>>, vector<2x16x128xf32>
    %167 = vector.shape_cast %166 : vector<2x16x128xf32> to vector<32x128xf32>
    %168 = arith.truncf %167 : vector<32x128xf32> to vector<32x128xbf16>
    %c16 = arith.constant 16 : index
    %c0_148 = arith.constant 0 : index
    %c0_149 = arith.constant 0 : index
    %169 = vector.load %arg2[%c16, %c0_148, %c0_149] : memref<18x128x128xbf16, #tpu.memory_space<vmem>>, vector<1x128x128xbf16>
    %170 = vector.shape_cast %169 : vector<1x128x128xbf16> to vector<128x128xbf16>
    %cst_150 = arith.constant dense<0.000000e+00> : vector<32x128xf32>
    %171 = tpu.matmul %168, %170, %cst_150 {dimension_numbers = #tpu.dot_dimension_numbers<[1], [0], [0], [1], [0, 0, 1, 1], [], []>} : vector<32x128xbf16>, vector<128x128xbf16>, vector<32x128xf32> -> vector<32x128xf32>
    %172 = arith.addf %165, %171 : vector<32x128xf32>
    %c0_151 = arith.constant 0 : index
    %c2_152 = arith.constant 2 : index
    %c0_153 = arith.constant 0 : index
    %173 = vector.load %arg5[%c0_151, %c2_152, %c0_153] : memref<2x18x128xf32, #tpu.memory_space<vmem>>, vector<2x16x128xf32>
    %174 = vector.shape_cast %173 : vector<2x16x128xf32> to vector<32x128xf32>
    %175 = arith.truncf %174 : vector<32x128xf32> to vector<32x128xbf16>
    %c17_154 = arith.constant 17 : index
    %c0_155 = arith.constant 0 : index
    %c0_156 = arith.constant 0 : index
    %176 = vector.load %arg2[%c17_154, %c0_155, %c0_156] : memref<18x128x128xbf16, #tpu.memory_space<vmem>>, vector<1x128x128xbf16>
    %177 = vector.shape_cast %176 : vector<1x128x128xbf16> to vector<128x128xbf16>
    %cst_157 = arith.constant dense<0.000000e+00> : vector<32x128xf32>
    %178 = tpu.matmul %175, %177, %cst_157 {dimension_numbers = #tpu.dot_dimension_numbers<[1], [0], [0], [1], [0, 0, 1, 1], [], []>} : vector<32x128xbf16>, vector<128x128xbf16>, vector<32x128xf32> -> vector<32x128xf32>
    %179 = arith.addf %172, %178 : vector<32x128xf32>
    %cst_158 = arith.constant 1.000000e-01 : f32
    %180 = vector.broadcast %cst_158 : f32 to vector<32x128xf32>
    %181 = arith.mulf %180, %179 : vector<32x128xf32>
    %182 = arith.maximumf %179, %181 : vector<32x128xf32>
    %c0_159 = arith.constant 0 : index
    %c0_160 = arith.constant 0 : index
    %183 = vector.load %arg4[%c0_159, %c0_160] : memref<32x128xf32, #tpu.memory_space<vmem>>, vector<32x128xf32>
    tpu.vector_store %arg4[%c0_159, %c0_160], %182 {strides = array<i32>} : memref<32x128xf32, #tpu.memory_space<vmem>>, vector<32x128xf32>,
    return
  }
  func.func @transform_0(%arg0: i32) -> (i32, i32, i32) {
    %c0_i32 = arith.constant 0 : i32
    %c0_i32_0 = arith.constant 0 : i32
    %c0_i32_1 = arith.constant 0 : i32
    return %arg0, %c0_i32, %c0_i32_0 : i32, i32, i32
  }
  func.func @transform_1(%arg0: i32) -> (i32, i32, i32) {
    %c0_i32 = arith.constant 0 : i32
    %c0_i32_0 = arith.constant 0 : i32
    %c0_i32_1 = arith.constant 0 : i32
    %c0_i32_2 = arith.constant 0 : i32
    return %c0_i32, %c0_i32_0, %c0_i32_1 : i32, i32, i32
  }
  func.func @transform_2(%arg0: i32) -> (i32, i32, i32) {
    %c0_i32 = arith.constant 0 : i32
    %c0_i32_0 = arith.constant 0 : i32
    %c0_i32_1 = arith.constant 0 : i32
    %c0_i32_2 = arith.constant 0 : i32
    return %c0_i32, %c0_i32_0, %c0_i32_1 : i32, i32, i32
  }
  func.func @transform_3(%arg0: i32) -> (i32, i32) {
    %c0_i32 = arith.constant 0 : i32
    %c0_i32_0 = arith.constant 0 : i32
    return %arg0, %c0_i32 : i32, i32
  }
}

</mosaic_0001>

<bundles_post_ra>
// kernel: paraphraser_forward.1
= control target key start
LH: loop header
LB: loop body
LE: loop exit
PB: predicated region body
PF: predicated region fallthrough
CT: control target
= control target key end

     0   :  { %8 = vsyncpa [#allocation4], 0  ;;  %s3335_s12 = smov [#allocation3]   ;;  %s3421_s0 = inlined_call_operand.vmem [shape: f32[2,16,128], index: 0, kind: input, shape index: {}]   ;;  %s3422_s1 = inlined_call_operand.hbm [shape: bf16[18,128,128], index: 1, kind: input, shape index: {}]   ;;  %s3423_s2 = inlined_call_operand.vmem [shape: f32[6,1,128], index: 2, kind: input, shape index: {}]   ;;  %s3424_s3 = inlined_call_operand.vmem [shape: f32[32,128], index: 3, kind: output, shape index: {}]  }
   0x1   :  { %s16_s13 = sshll.u32 %s3335_s12, 4  ;;  %s3311_s16 = scalar_lea.hbm %s3422_s1, 18432  ;;  %s17_s13 = int_to_ptr.vmem [resolvable:$true] %s16_s13 }
   0x2   :  { %p3312_p0 = scmp.ne.s32.totalorder %s3422_s1, %s3311_s16  ;;  %p3315_p1 = scmp.lt.u32.totalorder %s3311_s16, %s3422_s1 }
   0x4   :  { %p3317_p2 = pnand %p3315_p1, %p3312_p0 }
   0x6   :  { %3320 = shalt.err (!%p3317_p2)
}
   0x7   :  { %s3321_s21 = scalar_lea.vmem %s17_s13, 18432  ;;  %p3326_p4 = scmp.lt.s32.totalorder %s17_s13, %s17_s13 }
   0x8   :  { %p3322_p3 = scmp.ne.s32.totalorder %s17_s13, %s3321_s21  ;;  %p3327_p5 = scmp.lt.s32.totalorder %s3321_s21, %s3321_s21 }
   0xa   :  { %p3328_p6 = por %p3327_p5, %p3326_p4 }
   0xc   :  { %p3329_p7 = pnand %p3328_p6, %p3322_p3 }
   0xe   :  { %3332 = shalt.err (!%p3329_p7)
}
   0xf   :  { %s3336_s22 = smov 64   ;;  %s3337_s23 = smov 4  }
  0x10   :  { %22 = dma.hbm_to_vmem [thread:$0]  %s3422_s1, 18432, %s17_s13, [#allocation4], %s3336_s22, %s3336_s22, %s3337_s23  }
  0x11   :  { %3333 = dma.done.wait [#allocation4], 18432  }
  0x12   :  { %3334 = vsyncadd [#allocation4], 4294948864  ;;  %v3338_v0 = vmov 0.0   ;;  %v3167_v1 = vld [vmem:[#allocation3] sm:$0xff]   ;;  %v3168_v2 = vld [vmem:[#allocation3 + $0x8] sm:$0xff]  }
  0x13   :  { %29 = vst [vmem:[#allocation2] sm:$0x1] %v3338_v0  ;;  %30 = vst [vmem:[#allocation2 + $0x18] sm:$0x1] %v3338_v0  ;;  %2731 = vmatprep.subr.bf16.mxu0 %v3167_v1  ;;  %v3169_v3 = vld [vmem:[#allocation3 + $0x10] sm:$0xff]   ;;  %v3170_v4 = vld [vmem:[#allocation3 + $0x18] sm:$0xff]  }
  0x14   :  { %31 = vst [vmem:[#allocation2 + $0x11] sm:$0x1] %v3338_v0  ;;  %32 = vst [vmem:[#allocation2 + $0x29] sm:$0x1] %v3338_v0  ;;  %2732 = vmatpush3.bf16.msra.mxu0 %v3167_v1  ;;  %v33_v5 = vld [vmem:[%s3421_s0] sm:$0xff]  ;;  %v34_v6 = vld [vmem:[%s3421_s0 + $0x8] sm:$0xff] }
  0x15   :  { %2733 = vmatprep.subr.bf16.mxu0 %v3168_v2  ;;  %37 = vst [vmem:[#allocation2 + $0x1] sm:$0xff] %v33_v5  ;;  %38 = vst [vmem:[#allocation2 + $0x9] sm:$0xff] %v34_v6  ;;  %v3380_v7 = vld [vmem:[%s3421_s0 + $0x10] sm:$0xff]  ;;  %v3385_v8 = vld [vmem:[%s3421_s0 + $0x18] sm:$0xff]  ;;  %v175_v23 = vpack.c.bf16 %v34_v6, %v33_v5 }
  0x16   :  { %39 = vst [vmem:[#allocation2 + $0x19] sm:$0xff] %v3380_v7  ;;  %40 = vst [vmem:[#allocation2 + $0x21] sm:$0xff] %v3385_v8  ;;  %v3171_v9 = vld [vmem:[#allocation3 + $0x20] sm:$0xff]   ;;  %v3172_v10 = vld [vmem:[#allocation3 + $0x28] sm:$0xff]   ;;  %v176_v34 = vpack.c.bf16 %v3385_v8, %v3380_v7 }
  0x17   :  { %v3173_v14 = vld [vmem:[#allocation3 + $0x30] sm:$0xff]   ;;  %v3174_v15 = vld [vmem:[#allocation3 + $0x38] sm:$0xff]   ;;  %v3175_v16 = vld [vmem:[#allocation3 + $0x40] sm:$0xff]  }
  0x18   :  { %2734 = vmatpush3.bf16.msra.mxu0 %v3168_v2  ;;  %v3191_v19 = vld [vmem:[#allocation3 + $0xc0] sm:$0xff]   ;;  %v3192_v20 = vld [vmem:[#allocation3 + $0xc8] sm:$0xff]   ;;  %v3193_v24 = vld [vmem:[#allocation3 + $0xd0] sm:$0xff]  }
  0x19   :  { %2735 = vmatprep.subr.bf16.mxu0 %v3169_v3  ;;  %v3176_v22 = vld [vmem:[#allocation3 + $0x48] sm:$0xff]   ;;  %2791 = vmatprep.subr.bf16.mxu1 %v3191_v19  ;;  %v3177_v25 = vld [vmem:[#allocation3 + $0x50] sm:$0xff]   ;;  %v3178_v26 = vld [vmem:[#allocation3 + $0x58] sm:$0xff]  }
  0x1a   :  { %2792 = vmatpush3.bf16.msra.mxu1 %v3191_v19  ;;  %v3179_v27 = vld [vmem:[#allocation3 + $0x60] sm:$0xff]   ;;  %v3180_v28 = vld [vmem:[#allocation3 + $0x68] sm:$0xff]   ;;  %v3181_v29 = vld [vmem:[#allocation3 + $0x70] sm:$0xff]  }
  0x1b   :  { %2793 = vmatprep.subr.bf16.mxu1 %v3192_v20  ;;  %v3182_v30 = vld [vmem:[#allocation3 + $0x78] sm:$0xff]   ;;  %v3183_v31 = vld [vmem:[#allocation3 + $0x80] sm:$0xff]   ;;  %v3184_v35 = vld [vmem:[#allocation3 + $0x88] sm:$0xff]  }
  0x1c   :  { %2736 = vmatpush3.bf16.msra.mxu0 %v3169_v3  ;;  %v48_v11 = vld [vmem:[#allocation2] sm:$0xff]  ;;  %v49_v12 = vld [vmem:[#allocation2 + $0x8] sm:$0xff]  ;;  %v3187_v39 = vld [vmem:[#allocation3 + $0xa0] sm:$0xff]  }
  0x1d   :  { %2737 = vmatprep.subr.bf16.mxu0 %v3170_v4  ;;  %v52_v13 = vpack.c.bf16 %v49_v12, %v48_v11  ;;  %v50_v17 = vld [vmem:[#allocation2 + $0x18] sm:$0xff]  ;;  %v51_v18 = vld [vmem:[#allocation2 + $0x20] sm:$0xff]  ;;  %v296_v33 = vld [vmem:[#allocation2 + $0xa] sm:$0xff] }
  0x1e   :  { %v53_v21 = vpack.c.bf16 %v51_v18, %v50_v17  ;;  %2794 = vmatpush3.bf16.msra.mxu1 %v3192_v20  ;;  %v295_v32 = vld [vmem:[#allocation2 + $0x2] sm:$0xff]  ;;  %v3188_v40 = vld [vmem:[#allocation3 + $0xa8] sm:$0xff]   ;;  %v3195_v47 = vld [vmem:[#allocation3 + $0xe0] sm:$0xff]  }
  0x1f   :  { %2747 = vmatprep.mubr.bf16.mxu0 %v52_v13  ;;  %2795 = vmatprep.subr.bf16.mxu1 %v3193_v24  ;;  %v299_v36 = vpack.c.bf16 %v296_v33, %v295_v32  ;;  %v3185_v37 = vld [vmem:[#allocation3 + $0x90] sm:$0xff]   ;;  %v3186_v38 = vld [vmem:[#allocation3 + $0x98] sm:$0xff]   ;;  %v3196_v48 = vld [vmem:[#allocation3 + $0xe8] sm:$0xff]  }
  0x20   :  { %2738 = vmatpush3.bf16.msra.mxu0 %v3170_v4  ;;  %v3189_v41 = vld [vmem:[#allocation3 + $0xb0] sm:$0xff]   ;;  %v3190_v42 = vld [vmem:[#allocation3 + $0xb8] sm:$0xff]   ;;  %v3199_v51 = vld [vmem:[#allocation3 + $0x100] sm:$0xff]  }
  0x21   :  { %2739 = vmatprep.subr.bf16.mxu0 %v3171_v9  ;;  %v297_v43 = vld [vmem:[#allocation2 + $0x1a] sm:$0xff]  ;;  %v298_v44 = vld [vmem:[#allocation2 + $0x22] sm:$0xff]  ;;  %v3215_v52 = vld [vmem:[#allocation3 + $0x180] sm:$0xff]  }
  0x22   :  { %2796 = vmatpush3.bf16.msra.mxu1 %v3193_v24  ;;  %v300_v45 = vpack.c.bf16 %v298_v44, %v297_v43  ;;  %v3194_v46 = vld [vmem:[#allocation3 + $0xd8] sm:$0xff]   ;;  %v3197_v49 = vld [vmem:[#allocation3 + $0xf0] sm:$0xff]   ;;  %v3216_v53 = vld [vmem:[#allocation3 + $0x188] sm:$0xff]  }
  0x23   :  { %2797 = vmatprep.subr.bf16.mxu1 %v3194_v46  ;;  %v3198_v50 = vld [vmem:[#allocation3 + $0xf8] sm:$0xff]   ;;  %v3217_v54 = vld [vmem:[#allocation3 + $0x190] sm:$0xff]   ;;  %v3203_v19 = vld [vmem:[#allocation3 + $0x120] sm:$0xff]  }
  0x24   :  { %2740 = vmatpush3.bf16.msra.mxu0 %v3171_v9  ;;  %v2396_v55 = vld [vmem:[%s3423_s2] ss:$0 sm:$0xff]  ;;  %v3202_v18 = vld [vmem:[#allocation3 + $0x118] sm:$0xff]   ;;  %v3204_v20 = vld [vmem:[#allocation3 + $0x128] sm:$0xff]  }
  0x25   :  { %2741 = vmatprep.subr.bf16.mxu0 %v3172_v10  ;;  %v3201_v17 = vld [vmem:[#allocation3 + $0x110] sm:$0xff]   ;;  %v3214_v33 = vld [vmem:[#allocation3 + $0x178] sm:$0xff]   ;;  %v3239_v43 = vld [vmem:[#allocation3 + $0x240] sm:$0xff]  }
  0x26   :  { %2798 = vmatpush3.bf16.msra.mxu1 %v3194_v46  ;;  %v3213_v32 = vld [vmem:[#allocation3 + $0x170] sm:$0xff]   ;;  %v3240_v44 = vld [vmem:[#allocation3 + $0x248] sm:$0xff]  }
  0x27   :  { %2799 = vmatprep.subr.bf16.mxu1 %v3195_v47  ;;  %v2422_v46 = vld [vmem:[%s3423_s2 + $0x1] ss:$0 sm:$0xff] }
  0x28   :  { %2742 = vmatpush3.bf16.msra.mxu0 %v3172_v10 }
  0x29   :  { %2743 = vmatprep.subr.bf16.mxu0 %v3173_v14 }
  0x2a   :  { %2800 = vmatpush3.bf16.msra.mxu1 %v3195_v47 }
  0x2b   :  { %2801 = vmatprep.subr.bf16.mxu1 %v3196_v48 }
  0x2c   :  { %2744 = vmatpush3.bf16.msra.mxu0 %v3173_v14 }
  0x2d   :  { %2745 = vmatprep.subr.bf16.mxu0 %v3174_v15 }
  0x2e   :  { %2802 = vmatpush3.bf16.msra.mxu1 %v3196_v48 }
  0x2f   :  { %2803 = vmatprep.subr.bf16.mxu1 %v3197_v49 }
  0x30   :  { %2746 = vmatpush3.bf16.msra.mxu0 %v3174_v15 }
  0x31   :  { %2751 = vmatprep.subr.bf16.mxu0 %v3175_v16 }
  0x32   :  { %2804 = vmatpush3.bf16.msra.mxu1 %v3197_v49 }
  0x33   :  { %2748 = vmatmul.mubr.bf16.vlgmr.msra.gmra.mrb[0].mxu0 %v53_v21  ;;  %2805 = vmatprep.subr.bf16.mxu1 %v3198_v50  ;;  %v3205_v21 = vld [vmem:[#allocation3 + $0x130] sm:$0xff]  }
  0x34   :  { %2752 = vmatpush3.bf16.msra.mxu0 %v3175_v16  ;;  %2767 = vmatprep.mubr.bf16.mxu0 %v175_v23  ;;  %v3200_v16 = vld [vmem:[#allocation3 + $0x108] sm:$0xff]   ;;  %v3207_v23 = vld [vmem:[#allocation3 + $0x140] sm:$0xff]  }
  0x35   :  { %2753 = vmatprep.subr.bf16.mxu0 %v3176_v22 }
  0x36   :  { %2806 = vmatpush3.bf16.msra.mxu1 %v3198_v50 }
  0x37   :  { %2811 = vmatprep.subr.bf16.mxu1 %v3199_v51 }
  0x38   :  { %2754 = vmatpush3.bf16.msra.mxu0 %v3176_v22  ;;  %v3206_v22 = vld [vmem:[#allocation3 + $0x138] sm:$0xff]  }
  0x39   :  { %2755 = vmatprep.subr.bf16.mxu0 %v3177_v25 }
  0x3c   :  { %2756 = vmatpush3.bf16.msra.mxu0 %v3177_v25 }
  0x3d   :  { %2757 = vmatprep.subr.bf16.mxu0 %v3178_v26 }
  0x40   :  { %2758 = vmatpush3.bf16.msra.mxu0 %v3178_v26  ;;  %v3208_v26 = vld [vmem:[#allocation3 + $0x148] sm:$0xff]  }
  0x41   :  { %2759 = vmatprep.subr.bf16.mxu0 %v3179_v27 }
  0x44   :  { %2760 = vmatpush3.bf16.msra.mxu0 %v3179_v27 }
  0x45   :  { %2761 = vmatprep.subr.bf16.mxu0 %v3180_v28 }
  0x48   :  { %2762 = vmatpush3.bf16.msra.mxu0 %v3180_v28  ;;  %v3209_v28 = vld [vmem:[#allocation3 + $0x150] sm:$0xff]  }
  0x49   :  { %2763 = vmatprep.subr.bf16.mxu0 %v3181_v29 }
  0x4c   :  { %2764 = vmatpush3.bf16.msra.mxu0 %v3181_v29  ;;  %v3210_v29 = vld [vmem:[#allocation3 + $0x158] sm:$0xff]  }
  0x4d   :  { %2765 = vmatprep.subr.bf16.mxu0 %v3182_v30 }
  0x50   :  { %2766 = vmatpush3.bf16.msra.mxu0 %v3182_v30  ;;  %v3211_v30 = vld [vmem:[#allocation3 + $0x160] sm:$0xff]  }
  0x51   :  { %2771 = vmatprep.subr.bf16.mxu0 %v3183_v31 }
  0x53   :  { %2768 = vmatmul.mubr.bf16.vlgmr.msra.gmra.mrb[0].mxu0 %v176_v34 }
  0x54   :  { %2772 = vmatpush3.bf16.msra.mxu0 %v3183_v31  ;;  %2787 = vmatprep.mubr.bf16.mxu0 %v299_v36  ;;  %v3212_v31 = vld [vmem:[#allocation3 + $0x168] sm:$0xff]  }
  0x55   :  { %2773 = vmatprep.subr.bf16.mxu0 %v3184_v35 }
  0x58   :  { %2774 = vmatpush3.bf16.msra.mxu0 %v3184_v35 }
  0x59   :  { %2775 = vmatprep.subr.bf16.mxu0 %v3185_v37 }
  0x5c   :  { %2776 = vmatpush3.bf16.msra.mxu0 %v3185_v37  ;;  %v3218_v37 = vld [vmem:[#allocation3 + $0x198] sm:$0xff]  }
  0x5d   :  { %2777 = vmatprep.subr.bf16.mxu0 %v3186_v38 }
  0x60   :  { %2778 = vmatpush3.bf16.msra.mxu0 %v3186_v38  ;;  %v3219_v38 = vld [vmem:[#allocation3 + $0x1a0] sm:$0xff]  }
  0x61   :  { %2779 = vmatprep.subr.bf16.mxu0 %v3187_v39 }
  0x64   :  { %2780 = vmatpush3.bf16.msra.mxu0 %v3187_v39  ;;  %v3220_v39 = vld [vmem:[#allocation3 + $0x1a8] sm:$0xff]  }
  0x65   :  { %2781 = vmatprep.subr.bf16.mxu0 %v3188_v40 }
  0x68   :  { %2782 = vmatpush3.bf16.msra.mxu0 %v3188_v40  ;;  %v3221_v40 = vld [vmem:[#allocation3 + $0x1b0] sm:$0xff]  }
  0x69   :  { %2783 = vmatprep.subr.bf16.mxu0 %v3189_v41 }
  0x6c   :  { %2784 = vmatpush3.bf16.msra.mxu0 %v3189_v41  ;;  %v3222_v41 = vld [vmem:[#allocation3 + $0x1b8] sm:$0xff]  }
  0x6d   :  { %2785 = vmatprep.subr.bf16.mxu0 %v3190_v42 }
  0x70   :  { %2786 = vmatpush3.bf16.msra.mxu0 %v3190_v42  ;;  %v3223_v42 = vld [vmem:[#allocation3 + $0x1c0] sm:$0xff]  }
  0x71   :  { %2851 = vmatprep.subr.bf16.mxu0 %v3215_v52 }
  0x73   :  { %2788 = vmatmul.mubr.bf16.vlgmr.msra.gmra.mrb[0].mxu0 %v300_v45  ;;  %v3241_v45 = vld [vmem:[#allocation3 + $0x250] sm:$0xff]  }
  0x74   :  { %2852 = vmatpush3.bf16.msra.mxu0 %v3215_v52 }
  0x75   :  { %2853 = vmatprep.subr.bf16.mxu0 %v3216_v53 }
  0x78   :  { %2854 = vmatpush3.bf16.msra.mxu0 %v3216_v53 }
  0x79   :  { %2855 = vmatprep.subr.bf16.mxu0 %v3217_v54 }
  0x7c   :  { %2856 = vmatpush3.bf16.msra.mxu0 %v3217_v54 }
  0x7d   :  { %2857 = vmatprep.subr.bf16.mxu0 %v3218_v37 }
  0x80   :  { %2858 = vmatpush3.bf16.msra.mxu0 %v3218_v37  ;;  %v2448_v37 = vld [vmem:[%s3423_s2 + $0x2] ss:$0 sm:$0xff] }
  0x81   :  { %2859 = vmatprep.subr.bf16.mxu0 %v3219_v38 }
  0x84   :  { %2860 = vmatpush3.bf16.msra.mxu0 %v3219_v38 }
  0x85   :  { %2861 = vmatprep.subr.bf16.mxu0 %v3220_v39 }
  0x88   :  { %2862 = vmatpush3.bf16.msra.mxu0 %v3220_v39 }
  0x89   :  { %2863 = vmatprep.subr.bf16.mxu0 %v3221_v40 }
  0x8c   :  { %2864 = vmatpush3.bf16.msra.mxu0 %v3221_v40 }
  0x8d   :  { %2865 = vmatprep.subr.bf16.mxu0 %v3222_v41 }
  0x90   :  { %2866 = vmatpush3.bf16.msra.mxu0 %v3222_v41 }
  0x91   :  { %2871 = vmatprep.subr.bf16.mxu0 %v3223_v42 }
 0x146   :  { %v2789_v56 = vpop.f32.mrb[0].mxu0 }
 0x147   :  { %v3091_v57 = vadd.f32 %v2789_v56, %v2396_v55  ;;  %v400_v58 = vpop.f32.mrb[1].mxu0 }
 0x148   :  { %v3092_v59 = vadd.f32 %v2396_v55, %v400_v58  ;;  %v2790_v60 = vpop.f32.mrb[2].mxu0 }
 0x149   :  { %v421_v61 = vmul.f32 0.1, %v3091_v57  ;;  %v3093_v62 = vadd.f32 %v2790_v60, %v2396_v55  ;;  %v403_v63 = vpop.f32.mrb[3].mxu0 }
 0x14a   :  { %v419_v0 = vmul.f32 0.1, %v3092_v59  ;;  %v3094_v1 = vadd.f32 %v2396_v55, %v403_v63 }
 0x14b   :  { %v425_v2 = vmax.f32 %v3091_v57, %v421_v61  ;;  %v422_v3 = vmul.f32 0.1, %v3093_v62 }
 0x14c   :  { %v423_v4 = vmax.f32 %v3092_v59, %v419_v0  ;;  %v420_v5 = vmul.f32 0.1, %v3094_v1 }
 0x14d   :  { %429 = vst [vmem:[#allocation2 + $0x19] sm:$0xff] %v425_v2  ;;  %v426_v6 = vmax.f32 %v3093_v62, %v422_v3 }
 0x14e   :  { %427 = vst [vmem:[#allocation2 + $0x1] sm:$0xff] %v423_v4  ;;  %v424_v7 = vmax.f32 %v3094_v1, %v420_v5 }
 0x14f   :  { %430 = vst [vmem:[#allocation2 + $0x21] sm:$0xff] %v426_v6  ;;  %v568_v8 = vpack.c.bf16 %v426_v6, %v425_v2 }
 0x150   :  { %428 = vst [vmem:[#allocation2 + $0x9] sm:$0xff] %v424_v7  ;;  %v567_v9 = vpack.c.bf16 %v424_v7, %v423_v4  ;;  %v3224_v7 = vld [vmem:[#allocation3 + $0x1c8] sm:$0xff]  }
 0x154   :  { %v441_v14 = vld [vmem:[#allocation2 + $0x18] sm:$0xff] }
 0x155   :  { %v439_v11 = vld [vmem:[#allocation2] sm:$0xff] }
 0x156   :  { %v442_v10 = vld [vmem:[#allocation2 + $0x20] sm:$0xff] }
 0x157   :  { %v440_v12 = vld [vmem:[#allocation2 + $0x8] sm:$0xff]  ;;  %v444_v15 = vpack.c.bf16 %v442_v10, %v441_v14  ;;  %v689_v34 = vld [vmem:[#allocation2 + $0x1a] sm:$0xff]  ;;  %v3227_v10 = vld [vmem:[#allocation3 + $0x1e0] sm:$0xff]  }
 0x158   :  { %v443_v13 = vpack.c.bf16 %v440_v12, %v439_v11  ;;  %v687_v24 = vld [vmem:[#allocation2 + $0x2] sm:$0xff]  ;;  %v688_v25 = vld [vmem:[#allocation2 + $0xa] sm:$0xff]  ;;  %v3228_v11 = vld [vmem:[#allocation3 + $0x1e8] sm:$0xff]  }
 0x159   :  { %v691_v27 = vpack.c.bf16 %v688_v25, %v687_v24  ;;  %v690_v35 = vld [vmem:[#allocation2 + $0x22] sm:$0xff]  ;;  %v3231_v14 = vld [vmem:[#allocation3 + $0x200] sm:$0xff]  }
 0x15a   :  { %2807 = vmatprep.mubr.bf16.mxu1 %v443_v13  ;;  %v692_v36 = vpack.c.bf16 %v690_v35, %v689_v34  ;;  %v3229_v12 = vld [vmem:[#allocation3 + $0x1f0] sm:$0xff]   ;;  %v3230_v13 = vld [vmem:[#allocation3 + $0x1f8] sm:$0xff]   ;;  %v3263_v34 = vld [vmem:[#allocation3 + $0x300] sm:$0xff]  }
 0x15b   :  { %2808 = vmatmul.mubr.bf16.vlgmr.msra.gmra.mrb[0].mxu1 %v444_v15  ;;  %v3238_v24 = vld [vmem:[#allocation3 + $0x238] sm:$0xff]   ;;  %v3264_v35 = vld [vmem:[#allocation3 + $0x308] sm:$0xff]  }
 0x15c   :  { %2812 = vmatpush3.bf16.msra.mxu1 %v3199_v51  ;;  %2827 = vmatprep.mubr.bf16.mxu1 %v567_v9  ;;  %v3226_v9 = vld [vmem:[#allocation3 + $0x1d8] sm:$0xff]  }
 0x15d   :  { %2813 = vmatprep.subr.bf16.mxu1 %v3200_v16 }
 0x160   :  { %2814 = vmatpush3.bf16.msra.mxu1 %v3200_v16 }
 0x161   :  { %2815 = vmatprep.subr.bf16.mxu1 %v3201_v17 }
 0x164   :  { %2816 = vmatpush3.bf16.msra.mxu1 %v3201_v17  ;;  %v3232_v17 = vld [vmem:[#allocation3 + $0x208] sm:$0xff]  }
 0x165   :  { %2817 = vmatprep.subr.bf16.mxu1 %v3202_v18 }
 0x168   :  { %2818 = vmatpush3.bf16.msra.mxu1 %v3202_v18 }
 0x169   :  { %2819 = vmatprep.subr.bf16.mxu1 %v3203_v19 }
 0x16c   :  { %2820 = vmatpush3.bf16.msra.mxu1 %v3203_v19  ;;  %v3233_v19 = vld [vmem:[#allocation3 + $0x210] sm:$0xff]  }
 0x16d   :  { %2821 = vmatprep.subr.bf16.mxu1 %v3204_v20 }
 0x170   :  { %2822 = vmatpush3.bf16.msra.mxu1 %v3204_v20  ;;  %v3234_v20 = vld [vmem:[#allocation3 + $0x218] sm:$0xff]  }
 0x171   :  { %2823 = vmatprep.subr.bf16.mxu1 %v3205_v21 }
 0x174   :  { %2824 = vmatpush3.bf16.msra.mxu1 %v3205_v21  ;;  %v3235_v21 = vld [vmem:[#allocation3 + $0x220] sm:$0xff]  }
 0x175   :  { %2825 = vmatprep.subr.bf16.mxu1 %v3206_v22 }
 0x178   :  { %2826 = vmatpush3.bf16.msra.mxu1 %v3206_v22  ;;  %v3236_v22 = vld [vmem:[#allocation3 + $0x228] sm:$0xff]  }
 0x179   :  { %2831 = vmatprep.subr.bf16.mxu1 %v3207_v23 }
 0x17b   :  { %2828 = vmatmul.mubr.bf16.vlgmr.msra.gmra.mrb[0].mxu1 %v568_v8  ;;  %v3225_v8 = vld [vmem:[#allocation3 + $0x1d0] sm:$0xff]  }
 0x17c   :  { %2832 = vmatpush3.bf16.msra.mxu1 %v3207_v23  ;;  %2847 = vmatprep.mubr.bf16.mxu1 %v691_v27  ;;  %v3237_v23 = vld [vmem:[#allocation3 + $0x230] sm:$0xff]  }
 0x17d   :  { %2833 = vmatprep.subr.bf16.mxu1 %v3208_v26 }
 0x180   :  { %2834 = vmatpush3.bf16.msra.mxu1 %v3208_v26 }
 0x181   :  { %2835 = vmatprep.subr.bf16.mxu1 %v3209_v28 }
 0x184   :  { %2836 = vmatpush3.bf16.msra.mxu1 %v3209_v28  ;;  %v3242_v28 = vld [vmem:[#allocation3 + $0x258] sm:$0xff]  }
 0x185   :  { %2837 = vmatprep.subr.bf16.mxu1 %v3210_v29 }
 0x188   :  { %2838 = vmatpush3.bf16.msra.mxu1 %v3210_v29  ;;  %v3243_v29 = vld [vmem:[#allocation3 + $0x260] sm:$0xff]  }
 0x189   :  { %2839 = vmatprep.subr.bf16.mxu1 %v3211_v30 }
 0x18c   :  { %2840 = vmatpush3.bf16.msra.mxu1 %v3211_v30  ;;  %v3244_v30 = vld [vmem:[#allocation3 + $0x268] sm:$0xff]  }
 0x18d   :  { %2841 = vmatprep.subr.bf16.mxu1 %v3212_v31 }
 0x190   :  { %2842 = vmatpush3.bf16.msra.mxu1 %v3212_v31  ;;  %v3245_v31 = vld [vmem:[#allocation3 + $0x270] sm:$0xff]  }
 0x191   :  { %2843 = vmatprep.subr.bf16.mxu1 %v3213_v32 }
 0x194   :  { %2844 = vmatpush3.bf16.msra.mxu1 %v3213_v32  ;;  %v3246_v32 = vld [vmem:[#allocation3 + $0x278] sm:$0xff]  }
 0x195   :  { %2845 = vmatprep.subr.bf16.mxu1 %v3214_v33 }
 0x198   :  { %2846 = vmatpush3.bf16.msra.mxu1 %v3214_v33  ;;  %v3247_v33 = vld [vmem:[#allocation3 + $0x280] sm:$0xff]  }
 0x199   :  { %2911 = vmatprep.subr.bf16.mxu1 %v3239_v43 }
 0x19b   :  { %2848 = vmatmul.mubr.bf16.vlgmr.msra.gmra.mrb[0].mxu1 %v692_v36  ;;  %v3265_v36 = vld [vmem:[#allocation3 + $0x310] sm:$0xff]  }
 0x19c   :  { %2912 = vmatpush3.bf16.msra.mxu1 %v3239_v43 }
 0x19d   :  { %2913 = vmatprep.subr.bf16.mxu1 %v3240_v44 }
 0x1a0   :  { %2914 = vmatpush3.bf16.msra.mxu1 %v3240_v44 }
 0x1a1   :  { %2915 = vmatprep.subr.bf16.mxu1 %v3241_v45 }
 0x1a4   :  { %2916 = vmatpush3.bf16.msra.mxu1 %v3241_v45 }
 0x1a5   :  { %2917 = vmatprep.subr.bf16.mxu1 %v3242_v28 }
 0x1a8   :  { %2918 = vmatpush3.bf16.msra.mxu1 %v3242_v28  ;;  %v2474_v28 = vld [vmem:[%s3423_s2 + $0x3] ss:$0 sm:$0xff] }
 0x1a9   :  { %2919 = vmatprep.subr.bf16.mxu1 %v3243_v29 }
 0x1ac   :  { %2920 = vmatpush3.bf16.msra.mxu1 %v3243_v29 }
 0x1ad   :  { %2921 = vmatprep.subr.bf16.mxu1 %v3244_v30 }
 0x1b0   :  { %2922 = vmatpush3.bf16.msra.mxu1 %v3244_v30 }
 0x1b1   :  { %2923 = vmatprep.subr.bf16.mxu1 %v3245_v31 }
 0x1b4   :  { %2924 = vmatpush3.bf16.msra.mxu1 %v3245_v31 }
 0x1b5   :  { %2925 = vmatprep.subr.bf16.mxu1 %v3246_v32 }
 0x1b8   :  { %2926 = vmatpush3.bf16.msra.mxu1 %v3246_v32 }
 0x1b9   :  { %2931 = vmatprep.subr.bf16.mxu1 %v3247_v33 }
 0x26e   :  { %v2849_v47 = vpop.f32.mrb[0].mxu1 }
 0x26f   :  { %v3095_v48 = vadd.f32 %v2849_v47, %v2422_v46  ;;  %v792_v49 = vpop.f32.mrb[1].mxu1 }
 0x270   :  { %v3096_v50 = vadd.f32 %v2422_v46, %v792_v49  ;;  %v2850_v51 = vpop.f32.mrb[2].mxu1 }
 0x271   :  { %v813_v52 = vmul.f32 0.1, %v3095_v48  ;;  %v3097_v53 = vadd.f32 %v2850_v51, %v2422_v46  ;;  %v795_v54 = vpop.f32.mrb[3].mxu1 }
 0x272   :  { %v811_v55 = vmul.f32 0.1, %v3096_v50  ;;  %v3098_v56 = vadd.f32 %v2422_v46, %v795_v54 }
 0x273   :  { %v817_v57 = vmax.f32 %v3095_v48, %v813_v52  ;;  %v814_v58 = vmul.f32 0.1, %v3097_v53 }
 0x274   :  { %v815_v59 = vmax.f32 %v3096_v50, %v811_v55  ;;  %v812_v60 = vmul.f32 0.1, %v3098_v56 }
 0x275   :  { %821 = vst [vmem:[#allocation2 + $0x19] sm:$0xff] %v817_v57  ;;  %v818_v61 = vmax.f32 %v3097_v53, %v814_v58 }
 0x276   :  { %819 = vst [vmem:[#allocation2 + $0x1] sm:$0xff] %v815_v59  ;;  %v816_v62 = vmax.f32 %v3098_v56, %v812_v60 }
 0x277   :  { %822 = vst [vmem:[#allocation2 + $0x21] sm:$0xff] %v818_v61  ;;  %v960_v63 = vpack.c.bf16 %v818_v61, %v817_v57 }
 0x278   :  { %820 = vst [vmem:[#allocation2 + $0x9] sm:$0xff] %v816_v62  ;;  %v959_v0 = vpack.c.bf16 %v816_v62, %v815_v59  ;;  %v3248_v62 = vld [vmem:[#allocation3 + $0x288] sm:$0xff]  }
 0x27c   :  { %v833_v5 = vld [vmem:[#allocation2 + $0x18] sm:$0xff] }
 0x27d   :  { %v831_v2 = vld [vmem:[#allocation2] sm:$0xff] }
 0x27e   :  { %v834_v1 = vld [vmem:[#allocation2 + $0x20] sm:$0xff] }
 0x27f   :  { %v832_v3 = vld [vmem:[#allocation2 + $0x8] sm:$0xff]  ;;  %v836_v6 = vpack.c.bf16 %v834_v1, %v833_v5  ;;  %v1081_v25 = vld [vmem:[#allocation2 + $0x1a] sm:$0xff]  ;;  %v3251_v1 = vld [vmem:[#allocation3 + $0x2a0] sm:$0xff]  }
 0x280   :  { %v835_v4 = vpack.c.bf16 %v832_v3, %v831_v2  ;;  %v1079_v15 = vld [vmem:[#allocation2 + $0x2] sm:$0xff]  ;;  %v1080_v16 = vld [vmem:[#allocation2 + $0xa] sm:$0xff]  ;;  %v3252_v2 = vld [vmem:[#allocation3 + $0x2a8] sm:$0xff]  }
 0x281   :  { %v1083_v18 = vpack.c.bf16 %v1080_v16, %v1079_v15  ;;  %v1082_v26 = vld [vmem:[#allocation2 + $0x22] sm:$0xff]  ;;  %v3255_v5 = vld [vmem:[#allocation3 + $0x2c0] sm:$0xff]  }
 0x282   :  { %2867 = vmatprep.mubr.bf16.mxu0 %v835_v4  ;;  %v1084_v27 = vpack.c.bf16 %v1082_v26, %v1081_v25  ;;  %v3253_v3 = vld [vmem:[#allocation3 + $0x2b0] sm:$0xff]   ;;  %v3254_v4 = vld [vmem:[#allocation3 + $0x2b8] sm:$0xff]   ;;  %v3287_v25 = vld [vmem:[#allocation3 + $0x3c0] sm:$0xff]  }
 0x283   :  { %2868 = vmatmul.mubr.bf16.vlgmr.msra.gmra.mrb[4].mxu0 %v836_v6  ;;  %v3262_v15 = vld [vmem:[#allocation3 + $0x2f8] sm:$0xff]   ;;  %v3288_v26 = vld [vmem:[#allocation3 + $0x3c8] sm:$0xff]  }
 0x284   :  { %2872 = vmatpush3.bf16.msra.mxu0 %v3223_v42  ;;  %2887 = vmatprep.mubr.bf16.mxu0 %v959_v0  ;;  %v3250_v0 = vld [vmem:[#allocation3 + $0x298] sm:$0xff]  }
 0x285   :  { %2873 = vmatprep.subr.bf16.mxu0 %v3224_v7 }
 0x288   :  { %2874 = vmatpush3.bf16.msra.mxu0 %v3224_v7 }
 0x289   :  { %2875 = vmatprep.subr.bf16.mxu0 %v3225_v8 }
 0x28c   :  { %2876 = vmatpush3.bf16.msra.mxu0 %v3225_v8  ;;  %v3256_v8 = vld [vmem:[#allocation3 + $0x2c8] sm:$0xff]  }
 0x28d   :  { %2877 = vmatprep.subr.bf16.mxu0 %v3226_v9 }
 0x290   :  { %2878 = vmatpush3.bf16.msra.mxu0 %v3226_v9 }
 0x291   :  { %2879 = vmatprep.subr.bf16.mxu0 %v3227_v10 }
 0x294   :  { %2880 = vmatpush3.bf16.msra.mxu0 %v3227_v10  ;;  %v3257_v10 = vld [vmem:[#allocation3 + $0x2d0] sm:$0xff]  }
 0x295   :  { %2881 = vmatprep.subr.bf16.mxu0 %v3228_v11 }
 0x298   :  { %2882 = vmatpush3.bf16.msra.mxu0 %v3228_v11  ;;  %v3258_v11 = vld [vmem:[#allocation3 + $0x2d8] sm:$0xff]  }
 0x299   :  { %2883 = vmatprep.subr.bf16.mxu0 %v3229_v12 }
 0x29c   :  { %2884 = vmatpush3.bf16.msra.mxu0 %v3229_v12  ;;  %v3259_v12 = vld [vmem:[#allocation3 + $0x2e0] sm:$0xff]  }
 0x29d   :  { %2885 = vmatprep.subr.bf16.mxu0 %v3230_v13 }
 0x2a0   :  { %2886 = vmatpush3.bf16.msra.mxu0 %v3230_v13  ;;  %v3260_v13 = vld [vmem:[#allocation3 + $0x2e8] sm:$0xff]  }
 0x2a1   :  { %2891 = vmatprep.subr.bf16.mxu0 %v3231_v14 }
 0x2a3   :  { %2888 = vmatmul.mubr.bf16.vlgmr.msra.gmra.mrb[4].mxu0 %v960_v63  ;;  %v3249_v63 = vld [vmem:[#allocation3 + $0x290] sm:$0xff]  }
 0x2a4   :  { %2892 = vmatpush3.bf16.msra.mxu0 %v3231_v14  ;;  %2907 = vmatprep.mubr.bf16.mxu0 %v1083_v18  ;;  %v3261_v14 = vld [vmem:[#allocation3 + $0x2f0] sm:$0xff]  }
 0x2a5   :  { %2893 = vmatprep.subr.bf16.mxu0 %v3232_v17 }
 0x2a8   :  { %2894 = vmatpush3.bf16.msra.mxu0 %v3232_v17 }
 0x2a9   :  { %2895 = vmatprep.subr.bf16.mxu0 %v3233_v19 }
 0x2ac   :  { %2896 = vmatpush3.bf16.msra.mxu0 %v3233_v19  ;;  %v3266_v19 = vld [vmem:[#allocation3 + $0x318] sm:$0xff]  }
 0x2ad   :  { %2897 = vmatprep.subr.bf16.mxu0 %v3234_v20 }
 0x2b0   :  { %2898 = vmatpush3.bf16.msra.mxu0 %v3234_v20  ;;  %v3267_v20 = vld [vmem:[#allocation3 + $0x320] sm:$0xff]  }
 0x2b1   :  { %2899 = vmatprep.subr.bf16.mxu0 %v3235_v21 }
 0x2b4   :  { %2900 = vmatpush3.bf16.msra.mxu0 %v3235_v21  ;;  %v3268_v21 = vld [vmem:[#allocation3 + $0x328] sm:$0xff]  }
 0x2b5   :  { %2901 = vmatprep.subr.bf16.mxu0 %v3236_v22 }
 0x2b8   :  { %2902 = vmatpush3.bf16.msra.mxu0 %v3236_v22  ;;  %v3269_v22 = vld [vmem:[#allocation3 + $0x330] sm:$0xff]  }
 0x2b9   :  { %2903 = vmatprep.subr.bf16.mxu0 %v3237_v23 }
 0x2bc   :  { %2904 = vmatpush3.bf16.msra.mxu0 %v3237_v23  ;;  %v3270_v23 = vld [vmem:[#allocation3 + $0x338] sm:$0xff]  }
 0x2bd   :  { %2905 = vmatprep.subr.bf16.mxu0 %v3238_v24 }
 0x2c0   :  { %2906 = vmatpush3.bf16.msra.mxu0 %v3238_v24  ;;  %v3271_v24 = vld [vmem:[#allocation3 + $0x340] sm:$0xff]  }
 0x2c1   :  { %2971 = vmatprep.subr.bf16.mxu0 %v3263_v34 }
 0x2c3   :  { %2908 = vmatmul.mubr.bf16.vlgmr.msra.gmra.mrb[4].mxu0 %v1084_v27  ;;  %v3289_v27 = vld [vmem:[#allocation3 + $0x3d0] sm:$0xff]  }
 0x2c4   :  { %2972 = vmatpush3.bf16.msra.mxu0 %v3263_v34 }
 0x2c5   :  { %2973 = vmatprep.subr.bf16.mxu0 %v3264_v35 }
 0x2c8   :  { %2974 = vmatpush3.bf16.msra.mxu0 %v3264_v35 }
 0x2c9   :  { %2975 = vmatprep.subr.bf16.mxu0 %v3265_v36 }
 0x2cc   :  { %2976 = vmatpush3.bf16.msra.mxu0 %v3265_v36 }
 0x2cd   :  { %2977 = vmatprep.subr.bf16.mxu0 %v3266_v19 }
 0x2d0   :  { %2978 = vmatpush3.bf16.msra.mxu0 %v3266_v19 }
 0x2d1   :  { %2979 = vmatprep.subr.bf16.mxu0 %v3267_v20 }
 0x2d4   :  { %2980 = vmatpush3.bf16.msra.mxu0 %v3267_v20 }
 0x2d5   :  { %2981 = vmatprep.subr.bf16.mxu0 %v3268_v21 }
 0x2d8   :  { %2982 = vmatpush3.bf16.msra.mxu0 %v3268_v21 }
 0x2d9   :  { %2983 = vmatprep.subr.bf16.mxu0 %v3269_v22 }
 0x2dc   :  { %2984 = vmatpush3.bf16.msra.mxu0 %v3269_v22 }
 0x2dd   :  { %2985 = vmatprep.subr.bf16.mxu0 %v3270_v23 }
 0x2e0   :  { %2986 = vmatpush3.bf16.msra.mxu0 %v3270_v23 }
 0x2e1   :  { %2991 = vmatprep.subr.bf16.mxu0 %v3271_v24 }
 0x396   :  { %v2909_v38 = vpop.f32.mrb[4].mxu0 }
 0x397   :  { %v3099_v39 = vadd.f32 %v2909_v38, %v2448_v37  ;;  %v1184_v40 = vpop.f32.mrb[5].mxu0 }
 0x398   :  { %v3100_v41 = vadd.f32 %v2448_v37, %v1184_v40  ;;  %v2910_v42 = vpop.f32.mrb[6].mxu0 }
 0x399   :  { %v1205_v43 = vmul.f32 0.1, %v3099_v39  ;;  %v3101_v44 = vadd.f32 %v2910_v42, %v2448_v37  ;;  %v1187_v45 = vpop.f32.mrb[7].mxu0 }
 0x39a   :  { %v1203_v46 = vmul.f32 0.1, %v3100_v41  ;;  %v3102_v47 = vadd.f32 %v2448_v37, %v1187_v45 }
 0x39b   :  { %v1209_v48 = vmax.f32 %v3099_v39, %v1205_v43  ;;  %v1206_v49 = vmul.f32 0.1, %v3101_v44 }
 0x39c   :  { %v1207_v50 = vmax.f32 %v3100_v41, %v1203_v46  ;;  %v1204_v51 = vmul.f32 0.1, %v3102_v47 }
 0x39d   :  { %1213 = vst [vmem:[#allocation2 + $0x19] sm:$0xff] %v1209_v48  ;;  %v1210_v52 = vmax.f32 %v3101_v44, %v1206_v49 }
 0x39e   :  { %1211 = vst [vmem:[#allocation2 + $0x1] sm:$0xff] %v1207_v50  ;;  %v1208_v53 = vmax.f32 %v3102_v47, %v1204_v51 }
 0x39f   :  { %1214 = vst [vmem:[#allocation2 + $0x21] sm:$0xff] %v1210_v52  ;;  %v1352_v54 = vpack.c.bf16 %v1210_v52, %v1209_v48 }
 0x3a0   :  { %1212 = vst [vmem:[#allocation2 + $0x9] sm:$0xff] %v1208_v53  ;;  %v1351_v55 = vpack.c.bf16 %v1208_v53, %v1207_v50  ;;  %v3272_v53 = vld [vmem:[#allocation3 + $0x348] sm:$0xff]  }
 0x3a4   :  { %v1225_v60 = vld [vmem:[#allocation2 + $0x18] sm:$0xff] }
 0x3a5   :  { %v1223_v57 = vld [vmem:[#allocation2] sm:$0xff] }
 0x3a6   :  { %v1226_v56 = vld [vmem:[#allocation2 + $0x20] sm:$0xff] }
 0x3a7   :  { %v1224_v58 = vld [vmem:[#allocation2 + $0x8] sm:$0xff]  ;;  %v1228_v61 = vpack.c.bf16 %v1226_v56, %v1225_v60  ;;  %v1473_v16 = vld [vmem:[#allocation2 + $0x1a] sm:$0xff]  ;;  %v3275_v56 = vld [vmem:[#allocation3 + $0x360] sm:$0xff]  }
 0x3a8   :  { %v1227_v59 = vpack.c.bf16 %v1224_v58, %v1223_v57  ;;  %v1471_v6 = vld [vmem:[#allocation2 + $0x2] sm:$0xff]  ;;  %v1472_v7 = vld [vmem:[#allocation2 + $0xa] sm:$0xff]  ;;  %v3276_v57 = vld [vmem:[#allocation3 + $0x368] sm:$0xff]  }
 0x3a9   :  { %v1475_v9 = vpack.c.bf16 %v1472_v7, %v1471_v6  ;;  %v1474_v17 = vld [vmem:[#allocation2 + $0x22] sm:$0xff]  ;;  %v3279_v60 = vld [vmem:[#allocation3 + $0x380] sm:$0xff]  }
 0x3aa   :  { %2927 = vmatprep.mubr.bf16.mxu1 %v1227_v59  ;;  %v1476_v18 = vpack.c.bf16 %v1474_v17, %v1473_v16  ;;  %v3277_v58 = vld [vmem:[#allocation3 + $0x370] sm:$0xff]   ;;  %v3278_v59 = vld [vmem:[#allocation3 + $0x378] sm:$0xff]  }
 0x3ab   :  { %2928 = vmatmul.mubr.bf16.vlgmr.msra.gmra.mrb[4].mxu1 %v1228_v61  ;;  %v3286_v6 = vld [vmem:[#allocation3 + $0x3b8] sm:$0xff]   ;;  %v2500_v16 = vld [vmem:[%s3423_s2 + $0x4] ss:$0 sm:$0xff] }
 0x3ac   :  { %2932 = vmatpush3.bf16.msra.mxu1 %v3247_v33  ;;  %2947 = vmatprep.mubr.bf16.mxu1 %v1351_v55  ;;  %v3274_v55 = vld [vmem:[#allocation3 + $0x358] sm:$0xff]  }
 0x3ad   :  { %2933 = vmatprep.subr.bf16.mxu1 %v3248_v62 }
 0x3b0   :  { %2934 = vmatpush3.bf16.msra.mxu1 %v3248_v62 }
 0x3b1   :  { %2935 = vmatprep.subr.bf16.mxu1 %v3249_v63 }
 0x3b4   :  { %2936 = vmatpush3.bf16.msra.mxu1 %v3249_v63  ;;  %v3280_v63 = vld [vmem:[#allocation3 + $0x388] sm:$0xff]  }
 0x3b5   :  { %2937 = vmatprep.subr.bf16.mxu1 %v3250_v0 }
 0x3b8   :  { %2938 = vmatpush3.bf16.msra.mxu1 %v3250_v0 }
 0x3b9   :  { %2939 = vmatprep.subr.bf16.mxu1 %v3251_v1 }
 0x3bc   :  { %2940 = vmatpush3.bf16.msra.mxu1 %v3251_v1  ;;  %v3281_v1 = vld [vmem:[#allocation3 + $0x390] sm:$0xff]  }
 0x3bd   :  { %2941 = vmatprep.subr.bf16.mxu1 %v3252_v2 }
 0x3c0   :  { %2942 = vmatpush3.bf16.msra.mxu1 %v3252_v2  ;;  %v3282_v2 = vld [vmem:[#allocation3 + $0x398] sm:$0xff]  }
 0x3c1   :  { %2943 = vmatprep.subr.bf16.mxu1 %v3253_v3 }
 0x3c4   :  { %2944 = vmatpush3.bf16.msra.mxu1 %v3253_v3  ;;  %v3283_v3 = vld [vmem:[#allocation3 + $0x3a0] sm:$0xff]  }
 0x3c5   :  { %2945 = vmatprep.subr.bf16.mxu1 %v3254_v4 }
 0x3c8   :  { %2946 = vmatpush3.bf16.msra.mxu1 %v3254_v4  ;;  %v3284_v4 = vld [vmem:[#allocation3 + $0x3a8] sm:$0xff]  }
 0x3c9   :  { %2951 = vmatprep.subr.bf16.mxu1 %v3255_v5 }
 0x3cb   :  { %2948 = vmatmul.mubr.bf16.vlgmr.msra.gmra.mrb[4].mxu1 %v1352_v54  ;;  %v3273_v54 = vld [vmem:[#allocation3 + $0x350] sm:$0xff]  }
 0x3cc   :  { %2952 = vmatpush3.bf16.msra.mxu1 %v3255_v5  ;;  %2967 = vmatprep.mubr.bf16.mxu1 %v1475_v9  ;;  %v3285_v5 = vld [vmem:[#allocation3 + $0x3b0] sm:$0xff]  }
 0x3cd   :  { %2953 = vmatprep.subr.bf16.mxu1 %v3256_v8 }
 0x3d0   :  { %2954 = vmatpush3.bf16.msra.mxu1 %v3256_v8 }
 0x3d1   :  { %2955 = vmatprep.subr.bf16.mxu1 %v3257_v10 }
 0x3d4   :  { %2956 = vmatpush3.bf16.msra.mxu1 %v3257_v10  ;;  %v3290_v10 = vld [vmem:[#allocation3 + $0x3d8] sm:$0xff]  }
 0x3d5   :  { %2957 = vmatprep.subr.bf16.mxu1 %v3258_v11 }
 0x3d8   :  { %2958 = vmatpush3.bf16.msra.mxu1 %v3258_v11  ;;  %v3291_v11 = vld [vmem:[#allocation3 + $0x3e0] sm:$0xff]  }
 0x3d9   :  { %2959 = vmatprep.subr.bf16.mxu1 %v3259_v12 }
 0x3dc   :  { %2960 = vmatpush3.bf16.msra.mxu1 %v3259_v12  ;;  %v3292_v12 = vld [vmem:[#allocation3 + $0x3e8] sm:$0xff]  }
 0x3dd   :  { %2961 = vmatprep.subr.bf16.mxu1 %v3260_v13 }
 0x3e0   :  { %2962 = vmatpush3.bf16.msra.mxu1 %v3260_v13  ;;  %v3293_v13 = vld [vmem:[#allocation3 + $0x3f0] sm:$0xff]  }
 0x3e1   :  { %2963 = vmatprep.subr.bf16.mxu1 %v3261_v14 }
 0x3e4   :  { %2964 = vmatpush3.bf16.msra.mxu1 %v3261_v14  ;;  %v3294_v14 = vld [vmem:[#allocation3 + $0x3f8] sm:$0xff]  }
 0x3e5   :  { %2965 = vmatprep.subr.bf16.mxu1 %v3262_v15 }
 0x3e8   :  { %2966 = vmatpush3.bf16.msra.mxu1 %v3262_v15  ;;  %v3295_v15 = vld [vmem:[#allocation3 + $0x400] sm:$0xff]  }
 0x3e9   :  { %3031 = vmatprep.subr.bf16.mxu1 %v3287_v25 }
 0x3eb   :  { %2968 = vmatmul.mubr.bf16.vlgmr.msra.gmra.mrb[4].mxu1 %v1476_v18 }
 0x3ec   :  { %3032 = vmatpush3.bf16.msra.mxu1 %v3287_v25 }
 0x3ed   :  { %3033 = vmatprep.subr.bf16.mxu1 %v3288_v26 }
 0x3f0   :  { %3034 = vmatpush3.bf16.msra.mxu1 %v3288_v26 }
 0x3f1   :  { %3035 = vmatprep.subr.bf16.mxu1 %v3289_v27 }
 0x3f4   :  { %3036 = vmatpush3.bf16.msra.mxu1 %v3289_v27 }
 0x3f5   :  { %3037 = vmatprep.subr.bf16.mxu1 %v3290_v10 }
 0x3f8   :  { %3038 = vmatpush3.bf16.msra.mxu1 %v3290_v10 }
 0x3f9   :  { %3039 = vmatprep.subr.bf16.mxu1 %v3291_v11 }
 0x3fc   :  { %3040 = vmatpush3.bf16.msra.mxu1 %v3291_v11 }
 0x3fd   :  { %3041 = vmatprep.subr.bf16.mxu1 %v3292_v12 }
 0x400   :  { %3042 = vmatpush3.bf16.msra.mxu1 %v3292_v12 }
 0x401   :  { %3043 = vmatprep.subr.bf16.mxu1 %v3293_v13 }
 0x404   :  { %3044 = vmatpush3.bf16.msra.mxu1 %v3293_v13 }
 0x405   :  { %3045 = vmatprep.subr.bf16.mxu1 %v3294_v14 }
 0x408   :  { %3046 = vmatpush3.bf16.msra.mxu1 %v3294_v14 }
 0x409   :  { %3051 = vmatprep.subr.bf16.mxu1 %v3295_v15 }
 0x4be   :  { %v2969_v29 = vpop.f32.mrb[4].mxu1 }
 0x4bf   :  { %v3103_v30 = vadd.f32 %v2969_v29, %v2474_v28  ;;  %v1576_v31 = vpop.f32.mrb[5].mxu1 }
 0x4c0   :  { %v3104_v32 = vadd.f32 %v2474_v28, %v1576_v31  ;;  %v2970_v33 = vpop.f32.mrb[6].mxu1 }
 0x4c1   :  { %v1597_v34 = vmul.f32 0.1, %v3103_v30  ;;  %v3105_v35 = vadd.f32 %v2970_v33, %v2474_v28  ;;  %v1579_v36 = vpop.f32.mrb[7].mxu1 }
 0x4c2   :  { %v1595_v37 = vmul.f32 0.1, %v3104_v32  ;;  %v3106_v38 = vadd.f32 %v2474_v28, %v1579_v36 }
 0x4c3   :  { %v1601_v39 = vmax.f32 %v3103_v30, %v1597_v34  ;;  %v1598_v40 = vmul.f32 0.1, %v3105_v35 }
 0x4c4   :  { %v1599_v41 = vmax.f32 %v3104_v32, %v1595_v37  ;;  %v1596_v42 = vmul.f32 0.1, %v3106_v38 }
 0x4c5   :  { %1605 = vst [vmem:[#allocation2 + $0x19] sm:$0xff] %v1601_v39  ;;  %v1602_v43 = vmax.f32 %v3105_v35, %v1598_v40 }
 0x4c6   :  { %1603 = vst [vmem:[#allocation2 + $0x1] sm:$0xff] %v1599_v41  ;;  %v1600_v44 = vmax.f32 %v3106_v38, %v1596_v42  ;;  %v3297_v42 = vld [vmem:[#allocation3 + $0x410] sm:$0xff]  }
 0x4c7   :  { %1606 = vst [vmem:[#allocation2 + $0x21] sm:$0xff] %v1602_v43  ;;  %v1744_v45 = vpack.c.bf16 %v1602_v43, %v1601_v39  ;;  %v3298_v43 = vld [vmem:[#allocation3 + $0x418] sm:$0xff]  }
 0x4c8   :  { %1604 = vst [vmem:[#allocation2 + $0x9] sm:$0xff] %v1600_v44  ;;  %v1743_v46 = vpack.c.bf16 %v1600_v44, %v1599_v41  ;;  %v3296_v41 = vld [vmem:[#allocation3 + $0x408] sm:$0xff]   ;;  %v3299_v44 = vld [vmem:[#allocation3 + $0x420] sm:$0xff]  }
 0x4cc   :  { %v1617_v51 = vld [vmem:[#allocation2 + $0x18] sm:$0xff] }
 0x4cd   :  { %v1615_v48 = vld [vmem:[#allocation2] sm:$0xff] }
 0x4ce   :  { %v1618_v47 = vld [vmem:[#allocation2 + $0x20] sm:$0xff] }
 0x4cf   :  { %v1616_v49 = vld [vmem:[#allocation2 + $0x8] sm:$0xff]  ;;  %v1620_v52 = vpack.c.bf16 %v1618_v47, %v1617_v51  ;;  %v1865_v7 = vld [vmem:[#allocation2 + $0x1a] sm:$0xff] }
 0x4d0   :  { %v1619_v50 = vpack.c.bf16 %v1616_v49, %v1615_v48  ;;  %v1863_v61 = vld [vmem:[#allocation2 + $0x2] sm:$0xff]  ;;  %v1864_v62 = vld [vmem:[#allocation2 + $0xa] sm:$0xff]  ;;  %v3304_v51 = vld [vmem:[#allocation3 + $0x448] sm:$0xff]  }
 0x4d1   :  { %v1867_v0 = vpack.c.bf16 %v1864_v62, %v1863_v61  ;;  %v1866_v8 = vld [vmem:[#allocation2 + $0x22] sm:$0xff]  ;;  %v3303_v48 = vld [vmem:[#allocation3 + $0x440] sm:$0xff]  }
 0x4d2   :  { %2987 = vmatprep.mubr.bf16.mxu0 %v1619_v50  ;;  %v1868_v9 = vpack.c.bf16 %v1866_v8, %v1865_v7  ;;  %v3302_v47 = vld [vmem:[#allocation3 + $0x438] sm:$0xff]   ;;  %v2526_v62 = vld [vmem:[%s3423_s2 + $0x5] ss:$0 sm:$0xff] }
 0x4d3   :  { %2988 = vmatmul.mubr.bf16.vlgmr.msra.gmra.mrb[8].mxu0 %v1620_v52 }
 0x4d4   :  { %2992 = vmatpush3.bf16.msra.mxu0 %v3271_v24  ;;  %3007 = vmatprep.mubr.bf16.mxu0 %v1743_v46  ;;  %v3301_v46 = vld [vmem:[#allocation3 + $0x430] sm:$0xff]  }
 0x4d5   :  { %2993 = vmatprep.subr.bf16.mxu0 %v3272_v53 }
 0x4d8   :  { %2994 = vmatpush3.bf16.msra.mxu0 %v3272_v53  ;;  %v3305_v53 = vld [vmem:[#allocation3 + $0x450] sm:$0xff]  }
 0x4d9   :  { %2995 = vmatprep.subr.bf16.mxu0 %v3273_v54 }
 0x4dc   :  { %2996 = vmatpush3.bf16.msra.mxu0 %v3273_v54  ;;  %v3306_v54 = vld [vmem:[#allocation3 + $0x458] sm:$0xff]  }
 0x4dd   :  { %2997 = vmatprep.subr.bf16.mxu0 %v3274_v55 }
 0x4e0   :  { %2998 = vmatpush3.bf16.msra.mxu0 %v3274_v55  ;;  %v3307_v55 = vld [vmem:[#allocation3 + $0x460] sm:$0xff]  }
 0x4e1   :  { %2999 = vmatprep.subr.bf16.mxu0 %v3275_v56 }
 0x4e4   :  { %3000 = vmatpush3.bf16.msra.mxu0 %v3275_v56  ;;  %v3308_v56 = vld [vmem:[#allocation3 + $0x468] sm:$0xff]  }
 0x4e5   :  { %3001 = vmatprep.subr.bf16.mxu0 %v3276_v57 }
 0x4e8   :  { %3002 = vmatpush3.bf16.msra.mxu0 %v3276_v57  ;;  %v3309_v57 = vld [vmem:[#allocation3 + $0x470] sm:$0xff]  }
 0x4e9   :  { %3003 = vmatprep.subr.bf16.mxu0 %v3277_v58 }
 0x4ec   :  { %3004 = vmatpush3.bf16.msra.mxu0 %v3277_v58  ;;  %v3310_v58 = vld [vmem:[#allocation3 + $0x478] sm:$0xff]  }
 0x4ed   :  { %3005 = vmatprep.subr.bf16.mxu0 %v3278_v59 }
 0x4f0   :  { %3006 = vmatpush3.bf16.msra.mxu0 %v3278_v59 }
 0x4f1   :  { %3011 = vmatprep.subr.bf16.mxu0 %v3279_v60 }
 0x4f3   :  { %3008 = vmatmul.mubr.bf16.vlgmr.msra.gmra.mrb[8].mxu0 %v1744_v45  ;;  %v3300_v45 = vld [vmem:[#allocation3 + $0x428] sm:$0xff]  }
 0x4f4   :  { %3012 = vmatpush3.bf16.msra.mxu0 %v3279_v60  ;;  %3027 = vmatprep.mubr.bf16.mxu0 %v1867_v0 }
 0x4f5   :  { %3013 = vmatprep.subr.bf16.mxu0 %v3280_v63 }
 0x4f8   :  { %3014 = vmatpush3.bf16.msra.mxu0 %v3280_v63 }
 0x4f9   :  { %3015 = vmatprep.subr.bf16.mxu0 %v3281_v1 }
 0x4fc   :  { %3016 = vmatpush3.bf16.msra.mxu0 %v3281_v1 }
 0x4fd   :  { %3017 = vmatprep.subr.bf16.mxu0 %v3282_v2 }
 0x500   :  { %3018 = vmatpush3.bf16.msra.mxu0 %v3282_v2 }
 0x501   :  { %3019 = vmatprep.subr.bf16.mxu0 %v3283_v3 }
 0x504   :  { %3020 = vmatpush3.bf16.msra.mxu0 %v3283_v3 }
 0x505   :  { %3021 = vmatprep.subr.bf16.mxu0 %v3284_v4 }
 0x508   :  { %3022 = vmatpush3.bf16.msra.mxu0 %v3284_v4 }
 0x509   :  { %3023 = vmatprep.subr.bf16.mxu0 %v3285_v5 }
 0x50c   :  { %3024 = vmatpush3.bf16.msra.mxu0 %v3285_v5 }
 0x50d   :  { %3025 = vmatprep.subr.bf16.mxu0 %v3286_v6 }
 0x510   :  { %3026 = vmatpush3.bf16.msra.mxu0 %v3286_v6 }
 0x513   :  { %3028 = vmatmul.mubr.bf16.vlgmr.msra.gmra.mrb[8].mxu0 %v1868_v9 }
 0x5e6   :  { %v3029_v17 = vpop.f32.mrb[8].mxu0 }
 0x5e7   :  { %v3107_v18 = vadd.f32 %v3029_v17, %v2500_v16  ;;  %v1968_v19 = vpop.f32.mrb[9].mxu0 }
 0x5e8   :  { %v3108_v20 = vadd.f32 %v2500_v16, %v1968_v19  ;;  %v3030_v21 = vpop.f32.mrb[10].mxu0 }
 0x5e9   :  { %v1989_v22 = vmul.f32 0.1, %v3107_v18  ;;  %v3109_v23 = vadd.f32 %v3030_v21, %v2500_v16  ;;  %v1971_v24 = vpop.f32.mrb[11].mxu0 }
 0x5ea   :  { %v1987_v25 = vmul.f32 0.1, %v3108_v20  ;;  %v3110_v26 = vadd.f32 %v2500_v16, %v1971_v24 }
 0x5eb   :  { %v1993_v27 = vmax.f32 %v3107_v18, %v1989_v22  ;;  %v1990_v28 = vmul.f32 0.1, %v3109_v23 }
 0x5ec   :  { %v1991_v29 = vmax.f32 %v3108_v20, %v1987_v25  ;;  %v1988_v30 = vmul.f32 0.1, %v3110_v26 }
 0x5ed   :  { %1997 = vst [vmem:[#allocation2 + $0x19] sm:$0xff] %v1993_v27  ;;  %v1994_v31 = vmax.f32 %v3109_v23, %v1990_v28 }
 0x5ee   :  { %1995 = vst [vmem:[#allocation2 + $0x1] sm:$0xff] %v1991_v29  ;;  %v1992_v32 = vmax.f32 %v3110_v26, %v1988_v30 }
 0x5ef   :  { %1998 = vst [vmem:[#allocation2 + $0x21] sm:$0xff] %v1994_v31  ;;  %v2136_v33 = vpack.c.bf16 %v1994_v31, %v1993_v27 }
 0x5f0   :  { %1996 = vst [vmem:[#allocation2 + $0x9] sm:$0xff] %v1992_v32  ;;  %v2135_v34 = vpack.c.bf16 %v1992_v32, %v1991_v29 }
 0x5f4   :  { %v2009_v39 = vld [vmem:[#allocation2 + $0x18] sm:$0xff] }
 0x5f5   :  { %v2007_v36 = vld [vmem:[#allocation2] sm:$0xff] }
 0x5f6   :  { %v2010_v35 = vld [vmem:[#allocation2 + $0x20] sm:$0xff] }
 0x5f7   :  { %v2008_v37 = vld [vmem:[#allocation2 + $0x8] sm:$0xff]  ;;  %v2012_v40 = vpack.c.bf16 %v2010_v35, %v2009_v39  ;;  %v2257_v59 = vld [vmem:[#allocation2 + $0x1a] sm:$0xff] }
 0x5f8   :  { %v2011_v38 = vpack.c.bf16 %v2008_v37, %v2007_v36  ;;  %v2255_v49 = vld [vmem:[#allocation2 + $0x2] sm:$0xff]  ;;  %v2256_v50 = vld [vmem:[#allocation2 + $0xa] sm:$0xff] }
 0x5f9   :  { %v2259_v52 = vpack.c.bf16 %v2256_v50, %v2255_v49  ;;  %v2258_v60 = vld [vmem:[#allocation2 + $0x22] sm:$0xff] }
 0x5fa   :  { %3047 = vmatprep.mubr.bf16.mxu1 %v2011_v38  ;;  %v2260_v61 = vpack.c.bf16 %v2258_v60, %v2257_v59 }
 0x5fb   :  { %3048 = vmatmul.mubr.bf16.vlgmr.msra.gmra.mrb[8].mxu1 %v2012_v40 }
 0x5fc   :  { %3052 = vmatpush3.bf16.msra.mxu1 %v3295_v15  ;;  %3067 = vmatprep.mubr.bf16.mxu1 %v2135_v34 }
 0x5fd   :  { %3053 = vmatprep.subr.bf16.mxu1 %v3296_v41 }
 0x600   :  { %3054 = vmatpush3.bf16.msra.mxu1 %v3296_v41 }
 0x601   :  { %3055 = vmatprep.subr.bf16.mxu1 %v3297_v42 }
 0x604   :  { %3056 = vmatpush3.bf16.msra.mxu1 %v3297_v42 }
 0x605   :  { %3057 = vmatprep.subr.bf16.mxu1 %v3298_v43 }
 0x608   :  { %3058 = vmatpush3.bf16.msra.mxu1 %v3298_v43 }
 0x609   :  { %3059 = vmatprep.subr.bf16.mxu1 %v3299_v44 }
 0x60c   :  { %3060 = vmatpush3.bf16.msra.mxu1 %v3299_v44 }
 0x60d   :  { %3061 = vmatprep.subr.bf16.mxu1 %v3300_v45 }
 0x610   :  { %3062 = vmatpush3.bf16.msra.mxu1 %v3300_v45 }
 0x611   :  { %3063 = vmatprep.subr.bf16.mxu1 %v3301_v46 }
 0x614   :  { %3064 = vmatpush3.bf16.msra.mxu1 %v3301_v46 }
 0x615   :  { %3065 = vmatprep.subr.bf16.mxu1 %v3302_v47 }
 0x618   :  { %3066 = vmatpush3.bf16.msra.mxu1 %v3302_v47 }
 0x619   :  { %3071 = vmatprep.subr.bf16.mxu1 %v3303_v48 }
 0x61b   :  { %3068 = vmatmul.mubr.bf16.vlgmr.msra.gmra.mrb[8].mxu1 %v2136_v33 }
 0x61c   :  { %3072 = vmatpush3.bf16.msra.mxu1 %v3303_v48  ;;  %3087 = vmatprep.mubr.bf16.mxu1 %v2259_v52 }
 0x61d   :  { %3073 = vmatprep.subr.bf16.mxu1 %v3304_v51 }
 0x620   :  { %3074 = vmatpush3.bf16.msra.mxu1 %v3304_v51 }
 0x621   :  { %3075 = vmatprep.subr.bf16.mxu1 %v3305_v53 }
 0x624   :  { %3076 = vmatpush3.bf16.msra.mxu1 %v3305_v53 }
 0x625   :  { %3077 = vmatprep.subr.bf16.mxu1 %v3306_v54 }
 0x628   :  { %3078 = vmatpush3.bf16.msra.mxu1 %v3306_v54 }
 0x629   :  { %3079 = vmatprep.subr.bf16.mxu1 %v3307_v55 }
 0x62c   :  { %3080 = vmatpush3.bf16.msra.mxu1 %v3307_v55 }
 0x62d   :  { %3081 = vmatprep.subr.bf16.mxu1 %v3308_v56 }
 0x630   :  { %3082 = vmatpush3.bf16.msra.mxu1 %v3308_v56 }
 0x631   :  { %3083 = vmatprep.subr.bf16.mxu1 %v3309_v57 }
 0x634   :  { %3084 = vmatpush3.bf16.msra.mxu1 %v3309_v57 }
 0x635   :  { %3085 = vmatprep.subr.bf16.mxu1 %v3310_v58 }
 0x638   :  { %3086 = vmatpush3.bf16.msra.mxu1 %v3310_v58 }
 0x63b   :  { %3088 = vmatmul.mubr.bf16.vlgmr.msra.gmra.mrb[8].mxu1 %v2260_v61 }
 0x70e   :  { %v3089_v63 = vpop.f32.mrb[8].mxu1 }
 0x70f   :  { %v3111_v0 = vadd.f32 %v3089_v63, %v2526_v62  ;;  %v2360_v1 = vpop.f32.mrb[9].mxu1 }
 0x710   :  { %v3112_v2 = vadd.f32 %v2526_v62, %v2360_v1  ;;  %v3090_v3 = vpop.f32.mrb[10].mxu1 }
 0x711   :  { %v2381_v4 = vmul.f32 0.1, %v3111_v0  ;;  %v3113_v5 = vadd.f32 %v3090_v3, %v2526_v62  ;;  %v2363_v6 = vpop.f32.mrb[11].mxu1 }
 0x712   :  { %v2379_v7 = vmul.f32 0.1, %v3112_v2  ;;  %v3114_v8 = vadd.f32 %v2526_v62, %v2363_v6 }
 0x713   :  { %v2385_v9 = vmax.f32 %v3111_v0, %v2381_v4  ;;  %v2382_v10 = vmul.f32 0.1, %v3113_v5 }
 0x714   :  { %v2383_v11 = vmax.f32 %v3112_v2, %v2379_v7  ;;  %v2380_v12 = vmul.f32 0.1, %v3114_v8 }
 0x715   :  { %2389 = vst [vmem:[%s3424_s3 + $0x10] sm:$0xff] %v2385_v9  ;;  %v2386_v13 = vmax.f32 %v3113_v5, %v2382_v10 }
 0x716   :  { %2387 = vst [vmem:[%s3424_s3] sm:$0xff] %v2383_v11  ;;  %v2384_v14 = vmax.f32 %v3114_v8, %v2380_v12 }
 0x717   :  { %2390 = vst [vmem:[%s3424_s3 + $0x18] sm:$0xff] %v2386_v13 }
 0x718   :  { %2388 = vst [vmem:[%s3424_s3 + $0x8] sm:$0xff] %v2384_v14 }
 0x719   :  { %2395 = vsyncpa [#allocation4], 1 }

</bundles_post_ra>
